<compile_context>
chip_gen: v5e
topology: v5e:2x2
jax: 0.10.0
libtpu: 0.0.40
codegen_flags: <defaults>
</compile_context>

<pallas_src>
import collections

import jax
import jax.numpy as jnp
from jax import lax
from jax.experimental import pallas as pl
from jax.experimental.pallas import tpu as pltpu

LRELU_SLOPE = 0.2
EPS = 1e-5


def _round_up(x, m):
    return (x + m - 1) // m * m


def _lrelu(x):
    return jnp.where(x > 0, x, LRELU_SLOPE * x)


def _pick_tm_target():
    # v5e/v6e (128 MiB VMEM): bigger row tiles; v7x (64 MiB) / unknown: 512.
    try:
        info_fn = getattr(pltpu, "get_tpu_info", None)
        if info_fn is not None:
            vmem = getattr(info_fn(), "vmem_capacity_bytes", 0) or 0
            if vmem >= (100 << 20):
                return 1024
    except Exception:
        pass
    return 512


TM_TARGET = _pick_tm_target()


def _vmem_limit(block_bytes):
    # Per-call limit: double-buffered blocks + slack; stays well under the
    # v7x 64 MiB physical VMEM so XLA glue fusions keep their scoped VMEM.
    need = 2 * block_bytes + (2 << 20)
    return int(min(max(need, 4 << 20), 56 << 20))


def _cparams(vmem_bytes):
    # All grids here are 1-D and fully independent -> "parallel" (megacore).
    return pltpu.CompilerParams(
        dimension_semantics=("parallel",),
        vmem_limit_bytes=int(vmem_bytes),
    )


# ----------------------------------------------------------------------------
# shp_code: ReflectionPad(1) + Conv3x3(bias) + InstanceNorm + LeakyReLU
# Lane-dense CHW orientation: per image the kernel computes (ngf, H*W).
# ----------------------------------------------------------------------------
def _shp_kernel(s_ref, w_ref, b_ref, o_ref):
    # s_ref: (1, 9*ncf, hw) bf16, w_ref: (ngf, 9*ncf) bf16, b_ref: (ngf, 1) f32
    acc = jnp.dot(w_ref[...], s_ref[0], preferred_element_type=jnp.float32)
    acc = acc + b_ref[...]
    # InstanceNorm2d(affine=False): per-(image, channel) stats over H*W lanes.
    mean = jnp.mean(acc, axis=1, keepdims=True)
    cx = acc - mean
    var = jnp.mean(cx * cx, axis=1, keepdims=True)
    y = cx * lax.rsqrt(var + EPS)
    o_ref[0] = _lrelu(y).astype(o_ref.dtype)


def shp_code_fwd(s_nchw, w_oihw, bias):
    n, ncf, h, w = s_nchw.shape
    ngf = w_oihw.shape[0]
    hw = h * w
    sp = jnp.pad(s_nchw.astype(jnp.bfloat16),
                 ((0, 0), (0, 0), (1, 1), (1, 1)), mode="reflect")
    # 3x3 taps straight from NCHW (tap-major, channel-minor along dim 1).
    taps = jnp.concatenate(
        [sp[:, :, di:di + h, dj:dj + w] for di in range(3) for dj in range(3)],
        axis=1,
    ).reshape(n, 9 * ncf, hw)
    wt = jnp.transpose(w_oihw, (0, 2, 3, 1)).reshape(ngf, 9 * ncf)
    wt = wt.astype(jnp.bfloat16)
    b = bias.reshape(ngf, 1).astype(jnp.float32)

    blk = 2 * (9 * ncf * hw + ngf * 9 * ncf + ngf * hw) + 4 * ngf
    out = pl.pallas_call(
        _shp_kernel,
        grid=(n,),
        in_specs=[
            pl.BlockSpec((1, 9 * ncf, hw), lambda i: (i, 0, 0)),
            pl.BlockSpec((ngf, 9 * ncf), lambda i: (0, 0)),
            pl.BlockSpec((ngf, 1), lambda i: (0, 0)),
        ],
        out_specs=pl.BlockSpec((1, ngf, hw), lambda i: (i, 0, 0)),
        out_shape=jax.ShapeDtypeStruct((n, ngf, hw), jnp.bfloat16),
        compiler_params=_cparams(_vmem_limit(blk)),
    )(taps, wt, b)
    return out.reshape(n, ngf, h, w)                      # NCHW bf16


# ----------------------------------------------------------------------------
# Conv2d(k=4, s=2, p=1, bias=False) as a single (M, 16*cin) x (16*cin, cout)
# matmul per row tile.  Optional fused LeakyReLU epilogue or partial-BN stats.
# ----------------------------------------------------------------------------
def _conv_lrelu_kernel(x_ref, w_ref, o_ref):
    acc = jnp.dot(x_ref[...], w_ref[...], preferred_element_type=jnp.float32)
    o_ref[...] = _lrelu(acc).astype(o_ref.dtype)


def _conv_stats_kernel(x_ref, w_ref, o_ref, stats_ref):
    acc = jnp.dot(x_ref[...], w_ref[...], preferred_element_type=jnp.float32)
    o_ref[...] = acc.astype(o_ref.dtype)
    # per-channel partial (sum, sum^2) for the downstream BatchNorm, computed
    # on the resident f32 accumulator and stored as one lane-dense row.
    s1 = jnp.sum(acc, axis=0, keepdims=True)
    s2 = jnp.sum(acc * acc, axis=0, keepdims=True)
    stats_ref[0] = jnp.concatenate([s1, s2], axis=-1)


def _scale_shift_lrelu_kernel(x_ref, sc_ref, sh_ref, o_ref):
    y = x_ref[...].astype(jnp.float32) * sc_ref[...] + sh_ref[...]
    o_ref[...] = _lrelu(y).astype(o_ref.dtype)


def _build_taps_16(parts):
    """im2col for a k4/s2/p1 conv, one fused XLA expression.

    parts: list of NHWC bf16 tensors whose channels are concatenated in
    PyTorch cat order; output rows are (n, oh, ow)-major, columns are
    (kh, kw)-major / channel-minor, matching _w16 below.
    """
    n, h, w = parts[0].shape[:3]
    assert h % 2 == 0 and w % 2 == 0
    ho, wo = h // 2, w // 2
    padded = [jnp.pad(p, ((0, 0), (1, 1), (1, 1), (0, 0))) for p in parts]
    cols = []
    for kh in range(4):
        for kw in range(4):
            for p in padded:
                cols.append(p[:, kh:kh + 2 * ho:2, kw:kw + 2 * wo:2, :])
    taps = jnp.concatenate(cols, axis=-1).astype(jnp.bfloat16)
    m = n * ho * wo
    return taps.reshape(m, taps.shape[-1]), m, n, ho, wo


def _w16(w_oihw):
    cout, cin = w_oihw.shape[:2]
    # (cout, cin, 4, 4) -> row index (kh*4 + kw)*cin + ci, column cout.
    return (jnp.transpose(w_oihw, (2, 3, 1, 0))
            .reshape(16 * cin, cout).astype(jnp.bfloat16))


def _choose_tiling(m):
    m8 = _round_up(m, 8)
    # >=2 tiles whenever M is non-trivial so the v7x megacore gets work on
    # both TensorCores; tile picked so padding waste stays below one tile.
    nt = max(pl.cdiv(m8, TM_TARGET), 2 if m8 >= 256 else 1)
    tm = _round_up(pl.cdiv(m8, nt), 8)
    return tm, _round_up(m8, tm)


def _conv_matmul(taps, w16, m, *, emit_stats):
    k = taps.shape[-1]
    cout = w16.shape[-1]
    tm, m_pad = _choose_tiling(m)
    if m_pad != m:
        # folded by XLA into the same fusion that builds the taps
        taps = jnp.pad(taps, ((0, m_pad - m), (0, 0)))
    grid_m = m_pad // tm

    blk = 2 * (tm * k + k * cout + tm * cout)
    in_specs = [
        pl.BlockSpec((tm, k), lambda i: (i, 0)),
        pl.BlockSpec((k, cout), lambda i: (0, 0)),
    ]
    if emit_stats:
        blk += 4 * 2 * cout
        out_shape = (jax.ShapeDtypeStruct((m_pad, cout), jnp.bfloat16),
                     jax.ShapeDtypeStruct((grid_m, 1, 2 * cout), jnp.float32))
        out_specs = (pl.BlockSpec((tm, cout), lambda i: (i, 0)),
                     pl.BlockSpec((1, 1, 2 * cout), lambda i: (i, 0, 0)))
        kernel = _conv_stats_kernel
    else:
        out_shape = jax.ShapeDtypeStruct((m_pad, cout), jnp.bfloat16)
        out_specs = pl.BlockSpec((tm, cout), lambda i: (i, 0))
        kernel = _conv_lrelu_kernel

    res = pl.pallas_call(
        kernel,
        grid=(grid_m,),
        in_specs=in_specs,
        out_specs=out_specs,
        out_shape=out_shape,
        compiler_params=_cparams(_vmem_limit(blk)),
    )(taps, w16)

    if emit_stats:
        rows, stats = res
    else:
        rows, stats = res, None
    return rows, stats, tm


ConvMeta = collections.namedtuple("ConvMeta", ["n", "ho", "wo", "cout", "m", "tm"])


def conv_lrelu_block(parts, w_oihw):
    """Conv(k4,s2,p1,bias=False) + LeakyReLU (fused in the matmul epilogue)."""
    taps, m, n, ho, wo = _build_taps_16(parts)
    rows, _, _ = _conv_matmul(taps, _w16(w_oihw), m, emit_stats=False)
    cout = w_oihw.shape[0]
    return rows[:m].reshape(n, ho, wo, cout)


def conv_stats_block(parts, w_oihw):
    """Conv(k4,s2,p1,bias=False); returns raw rows + partial BN stats."""
    taps, m, n, ho, wo = _build_taps_16(parts)
    rows, stats, tm = _conv_matmul(taps, _w16(w_oihw), m, emit_stats=True)
    cout = w_oihw.shape[0]
    return rows, stats, ConvMeta(n, ho, wo, cout, m, tm)


def _bn_params(stats, meta):
    tot = jnp.sum(stats.astype(jnp.float32), axis=(0, 1))     # (2*cout,)
    s1, s2 = tot[:meta.cout], tot[meta.cout:]
    mean = s1 / meta.m
    var = jnp.maximum(s2 / meta.m - mean * mean, 0.0)          # biased (training)
    scale = lax.rsqrt(var + EPS)                               # gamma = 1
    shift = -mean * scale                                      # beta = 0
    return scale, shift


def _bn_lrelu_nhwc(rows, scale, shift, meta):
    # BN scale/shift + LeakyReLU for the *previous* conv, folded lazily into
    # the next block's im2col fusion (applied before its zero-pad, so padding
    # semantics stay exact).  NOTE: applied to the bf16-rounded raw activation
    # while the stats came from the f32 accumulator - sub-bf16-ulp mismatch.
    x = rows[:meta.m].astype(jnp.float32) * scale + shift
    return _lrelu(x).astype(jnp.bfloat16).reshape(meta.n, meta.ho, meta.wo, meta.cout)


def _bn_lrelu_rows(rows, scale, shift, meta):
    """Final-block BN + LeakyReLU as a small fused Pallas epilogue."""
    m_pad, cout = rows.shape
    grid_m = m_pad // meta.tm
    blk = 2 * 2 * meta.tm * cout + 4 * 2 * cout
    y = pl.pallas_call(
        _scale_shift_lrelu_kernel,
        grid=(grid_m,),
        in_specs=[
            pl.BlockSpec((meta.tm, cout), lambda i: (i, 0)),
            pl.BlockSpec((1, cout), lambda i: (0, 0)),
            pl.BlockSpec((1, cout), lambda i: (0, 0)),
        ],
        out_specs=pl.BlockSpec((meta.tm, cout), lambda i: (i, 0)),
        out_shape=jax.ShapeDtypeStruct((m_pad, cout), jnp.bfloat16),
        compiler_params=_cparams(_vmem_limit(blk)),
    )(rows,
      scale.reshape(1, cout).astype(jnp.float32),
      shift.reshape(1, cout).astype(jnp.float32))
    return y[:meta.m].reshape(meta.n, meta.ho, meta.wo, cout)


# ----------------------------------------------------------------------------
# Parameter init (deterministic, Kaiming-like scale) and forward pass
# ----------------------------------------------------------------------------
def init_params(key, x_channel, ndf, ncf):
    def conv_w(k, shape):
        fan_in = shape[1] * shape[2] * shape[3]
        return jax.random.normal(k, shape, jnp.float32) * (1.0 / jnp.sqrt(fan_in))

    ngf = x_channel
    in_c = x_channel + ngf      # channels of cat([x_var, new_s_var], dim=1)
    keys = jax.random.split(key, 6)
    return {
        "shp_w": conv_w(keys[0], (ngf, ncf, 3, 3)),
        "shp_b": jax.random.normal(keys[1], (ngf,), jnp.float32) * 0.01,
        "c0_w": conv_w(keys[2], (ndf, in_c, 4, 4)),
        "c1_w": conv_w(keys[3], (ndf * 2, ndf, 4, 4)),
        "c2_w": conv_w(keys[4], (ndf * 4, ndf * 2, 4, 4)),
        "c3_w": conv_w(keys[5], (ndf * 8, ndf * 4, 4, 4)),
    }


def shp_d_net256_forward(params, x_var, s_var):
    """x_var: (N, x_channel, H, W), s_var: (N, ncf, H, W) (both NCHW)."""
    # shp_code runs straight on the NCHW s_var (lane-dense CHW kernel).
    new_s = shp_code_fwd(s_var, params["shp_w"], params["shp_b"])   # NCHW bf16

    # NHWC views of the two cat() operands; the full-resolution channel concat
    # itself never materializes - it is folded into block 0's im2col fusion.
    x_nhwc = jnp.transpose(x_var, (0, 2, 3, 1)).astype(jnp.bfloat16)
    s_nhwc = jnp.transpose(new_s, (0, 2, 3, 1))

    # img_code = encode_image_by_ntimes(in_c, ndf, 4)
    y0 = conv_lrelu_block([x_nhwc, s_nhwc], params["c0_w"])         # conv+lrelu

    raw, stats, meta = conv_stats_block([y0], params["c1_w"])       # conv (+stats)
    sc, sh = _bn_params(stats, meta)

    raw, stats, meta = conv_stats_block(
        [_bn_lrelu_nhwc(raw, sc, sh, meta)], params["c2_w"])
    sc, sh = _bn_params(stats, meta)

    raw, stats, meta = conv_stats_block(
        [_bn_lrelu_nhwc(raw, sc, sh, meta)], params["c3_w"])
    sc, sh = _bn_params(stats, meta)

    y = _bn_lrelu_rows(raw, sc, sh, meta)                           # last BN+lrelu

    # NHWC -> NCHW: (N, 8*ndf, H/16, W/16)
    return jnp.transpose(y, (0, 3, 1, 2)).astype(jnp.float32)


# ----------------------------------------------------------------------------
# Plain-XLA f32 reference (for a loose fidelity check in __main__ only)
# ----------------------------------------------------------------------------
def _reference_forward(params, x_var, s_var):
    f32 = jnp.float32
    x = x_var.astype(f32)
    s = s_var.astype(f32)

    sp = jnp.pad(s, ((0, 0), (0, 0), (1, 1), (1, 1)), mode="reflect")
    ns = lax.conv_general_dilated(
        sp, params["shp_w"].astype(f32), (1, 1), "VALID",
        dimension_numbers=("NCHW", "OIHW", "NCHW"))
    ns = ns + params["shp_b"].reshape(1, -1, 1, 1)
    mean = ns.mean(axis=(2, 3), keepdims=True)
    var = ns.var(axis=(2, 3), keepdims=True)
    ns = (ns - mean) * lax.rsqrt(var + EPS)
    ns = jnp.where(ns > 0, ns, LRELU_SLOPE * ns)

    h = jnp.concatenate([x, ns], axis=1)

    def conv(t, w):
        return lax.conv_general_dilated(
            t, w.astype(f32), (2, 2), [(1, 1), (1, 1)],
            dimension_numbers=("NCHW", "OIHW", "NCHW"))

    def bn_lrelu(t):
        mu = t.mean(axis=(0, 2, 3), keepdims=True)
        va = t.var(axis=(0, 2, 3), keepdims=True)
        y = (t - mu) * lax.rsqrt(va + EPS)
        return jnp.where(y > 0, y, LRELU_SLOPE * y)

    h = conv(h, params["c0_w"])
    h = jnp.where(h > 0, h, LRELU_SLOPE * h)
    for name in ("c1", "c2", "c3"):
        h = bn_lrelu(conv(h, params[name + "_w"]))
    return h


if __name__ == "__main__":
    # Small synthetic config:
    #   cfg.GAN.DF_DIM = ndf = 8, cfg.GAN.P_NUM = ncf = 3, x_channel = ngf = 4
    N, X_CH, NDF, NCF, H, W = 2, 4, 8, 3, 32, 32

    root = jax.random.PRNGKey(0)
    k_params, k_x, k_s = jax.random.split(root, 3)

    params = init_params(k_params, X_CH, NDF, NCF)
    x_var = jax.random.normal(k_x, (N, X_CH, H, W), jnp.float32)   # NCHW
    s_var = jax.random.normal(k_s, (N, NCF, H, W), jnp.float32)    # NCHW

    fwd = jax.jit(shp_d_net256_forward)
    out = jax.block_until_ready(fwd(params, x_var, s_var))

    assert out.shape == (N, NDF * 8, H // 16, W // 16), out.shape
    assert bool(jnp.all(jnp.isfinite(out)))

    # Loose fidelity check vs. a plain-XLA f32 reference (bf16 kernel path
    # keeps ~1-2% error on O(1) BatchNorm-ed outputs; threshold is generous).
    ref = jax.block_until_ready(jax.jit(_reference_forward)(params, x_var, s_var))
    assert float(jnp.max(jnp.abs(out - ref.astype(jnp.float32)))) < 0.5

    print("KERNEL_OK")
</pallas_src>

<mosaic_0001>
module attributes {stable_mosaic.version = 11 : i64} {
  func.func @_shp_kernel(%arg0: i32, %arg1: memref<1x27x1024xbf16, #tpu.memory_space<vmem>>, %arg2: memref<4x27xbf16, #tpu.memory_space<vmem>>, %arg3: memref<4x1xf32, #tpu.memory_space<vmem>>, %arg4: memref<1x4x1024xbf16, #tpu.memory_space<vmem>>) attributes {dimension_semantics = [#tpu.dimension_semantics<parallel>], iteration_bounds = array<i64: 2>, scalar_prefetch = 0 : i64, scratch_operands = 0 : i64, tpu.core_type = #tpu.core_type<tc>, window_params = [{transform_indices = @transform_0, window_bounds = array<i64: 1, 27, 1024>}, {pipeline_mode = #tpu.pipeline_mode<synchronous>, transform_indices = @transform_1, window_bounds = array<i64: 4, 27>}, {pipeline_mode = #tpu.pipeline_mode<synchronous>, transform_indices = @transform_2, window_bounds = array<i64: 4, 1>}, {transform_indices = @transform_3, window_bounds = array<i64: 1, 4, 1024>}]} {
    %c0 = arith.constant 0 : index
    %c0_0 = arith.constant 0 : index
    %0 = vector.load %arg2[%c0, %c0_0] : memref<4x27xbf16, #tpu.memory_space<vmem>>, vector<4x27xbf16>
    %c0_1 = arith.constant 0 : index
    %c0_2 = arith.constant 0 : index
    %c0_3 = arith.constant 0 : index
    %1 = vector.load %arg1[%c0_1, %c0_2, %c0_3] : memref<1x27x1024xbf16, #tpu.memory_space<vmem>>, vector<1x27x1024xbf16>
    %2 = vector.shape_cast %1 : vector<1x27x1024xbf16> to vector<27x1024xbf16>
    %cst = arith.constant dense<0.000000e+00> : vector<4x1024xf32>
    %3 = tpu.matmul %0, %2, %cst {dimension_numbers = #tpu.dot_dimension_numbers<[1], [0], [0], [1], [0, 0, 1, 1], [], []>} : vector<4x27xbf16>, vector<27x1024xbf16>, vector<4x1024xf32> -> vector<4x1024xf32>
    %c0_4 = arith.constant 0 : index
    %c0_5 = arith.constant 0 : index
    %4 = vector.load %arg3[%c0_4, %c0_5] : memref<4x1xf32, #tpu.memory_space<vmem>>, vector<4x1xf32>
    %5 = vector.broadcast %4 : vector<4x1xf32> to vector<4x1024xf32>
    %6 = arith.addf %3, %5 : vector<4x1024xf32>
    %cst_6 = arith.constant dense<0.000000e+00> : vector<4xf32>
    %7 = vector.multi_reduction <add>, %6, %cst_6 [1] : vector<4x1024xf32> to vector<4xf32>
    %8 = vector.shape_cast %7 : vector<4xf32> to vector<4x1xf32>
    %cst_7 = arith.constant 1.024000e+03 : f32
    %9 = vector.broadcast %cst_7 : f32 to vector<4x1xf32>
    %10 = arith.divf %8, %9 : vector<4x1xf32>
    %11 = vector.broadcast %10 : vector<4x1xf32> to vector<4x1024xf32>
    %12 = arith.subf %6, %11 : vector<4x1024xf32>
    %13 = arith.mulf %12, %12 : vector<4x1024xf32>
    %cst_8 = arith.constant dense<0.000000e+00> : vector<4xf32>
    %14 = vector.multi_reduction <add>, %13, %cst_8 [1] : vector<4x1024xf32> to vector<4xf32>
    %15 = vector.shape_cast %14 : vector<4xf32> to vector<4x1xf32>
    %cst_9 = arith.constant 1.024000e+03 : f32
    %16 = vector.broadcast %cst_9 : f32 to vector<4x1xf32>
    %17 = arith.divf %15, %16 : vector<4x1xf32>
    %cst_10 = arith.constant 9.99999974E-6 : f32
    %18 = vector.broadcast %cst_10 : f32 to vector<4x1xf32>
    %19 = arith.addf %17, %18 : vector<4x1xf32>
    %20 = math.rsqrt %19 : vector<4x1xf32>
    %21 = vector.broadcast %20 : vector<4x1xf32> to vector<4x1024xf32>
    %22 = arith.mulf %12, %21 : vector<4x1024xf32>
    %cst_11 = arith.constant 0.000000e+00 : f32
    %23 = vector.broadcast %cst_11 : f32 to vector<4x1024xf32>
    %24 = arith.cmpf ogt, %22, %23 : vector<4x1024xf32>
    %cst_12 = arith.constant 2.000000e-01 : f32
    %25 = vector.broadcast %cst_12 : f32 to vector<4x1024xf32>
    %26 = arith.mulf %25, %22 : vector<4x1024xf32>
    %27 = arith.select %24, %22, %26 : vector<4x1024xi1>, vector<4x1024xf32>
    %28 = arith.truncf %27 : vector<4x1024xf32> to vector<4x1024xbf16>
    %c0_13 = arith.constant 0 : index
    %c0_14 = arith.constant 0 : index
    %c0_15 = arith.constant 0 : index
    %29 = vector.load %arg4[%c0_13, %c0_14, %c0_15] : memref<1x4x1024xbf16, #tpu.memory_space<vmem>>, vector<1x4x1024xbf16>
    %30 = vector.shape_cast %29 : vector<1x4x1024xbf16> to vector<4x1024xbf16>
    %31 = vector.shape_cast %28 : vector<4x1024xbf16> to vector<1x4x1024xbf16>
    tpu.vector_store %arg4[%c0_13, %c0_14, %c0_15], %31 {strides = array<i32>} : memref<1x4x1024xbf16, #tpu.memory_space<vmem>>, vector<1x4x1024xbf16>,
    return
  }
  func.func @transform_0(%arg0: i32) -> (i32, i32, i32) {
    %c0_i32 = arith.constant 0 : i32
    %c0_i32_0 = arith.constant 0 : i32
    %c0_i32_1 = arith.constant 0 : i32
    return %arg0, %c0_i32, %c0_i32_0 : i32, i32, i32
  }
  func.func @transform_1(%arg0: i32) -> (i32, i32) {
    %c0_i32 = arith.constant 0 : i32
    %c0_i32_0 = arith.constant 0 : i32
    %c0_i32_1 = arith.constant 0 : i32
    return %c0_i32, %c0_i32_0 : i32, i32
  }
  func.func @transform_2(%arg0: i32) -> (i32, i32) {
    %c0_i32 = arith.constant 0 : i32
    %c0_i32_0 = arith.constant 0 : i32
    %c0_i32_1 = arith.constant 0 : i32
    return %c0_i32, %c0_i32_0 : i32, i32
  }
  func.func @transform_3(%arg0: i32) -> (i32, i32, i32) {
    %c0_i32 = arith.constant 0 : i32
    %c0_i32_0 = arith.constant 0 : i32
    %c0_i32_1 = arith.constant 0 : i32
    return %arg0, %c0_i32, %c0_i32_0 : i32, i32, i32
  }
}

module attributes {stable_mosaic.version = 11 : i64} {
  func.func @_conv_lrelu_kernel(%arg0: i32, %arg1: memref<256x128xbf16, #tpu.memory_space<vmem>>, %arg2: memref<128x8xbf16, #tpu.memory_space<vmem>>, %arg3: memref<256x8xbf16, #tpu.memory_space<vmem>>) attributes {dimension_semantics = [#tpu.dimension_semantics<parallel>], iteration_bounds = array<i64: 2>, scalar_prefetch = 0 : i64, scratch_operands = 0 : i64, tpu.core_type = #tpu.core_type<tc>, window_params = [{transform_indices = @transform_0, window_bounds = array<i64: 256, 128>}, {pipeline_mode = #tpu.pipeline_mode<synchronous>, transform_indices = @transform_1, window_bounds = array<i64: 128, 8>}, {transform_indices = @transform_2, window_bounds = array<i64: 256, 8>}]} {
    %c0 = arith.constant 0 : index
    %c0_0 = arith.constant 0 : index
    %0 = vector.load %arg1[%c0, %c0_0] : memref<256x128xbf16, #tpu.memory_space<vmem>>, vector<256x128xbf16>
    %c0_1 = arith.constant 0 : index
    %c0_2 = arith.constant 0 : index
    %1 = vector.load %arg2[%c0_1, %c0_2] : memref<128x8xbf16, #tpu.memory_space<vmem>>, vector<128x8xbf16>
    %cst = arith.constant dense<0.000000e+00> : vector<256x8xf32>
    %2 = tpu.matmul %0, %1, %cst {dimension_numbers = #tpu.dot_dimension_numbers<[1], [0], [0], [1], [0, 0, 1, 1], [], []>} : vector<256x128xbf16>, vector<128x8xbf16>, vector<256x8xf32> -> vector<256x8xf32>
    %cst_3 = arith.constant 0.000000e+00 : f32
    %3 = vector.broadcast %cst_3 : f32 to vector<256x8xf32>
    %4 = arith.cmpf ogt, %2, %3 : vector<256x8xf32>
    %cst_4 = arith.constant 2.000000e-01 : f32
    %5 = vector.broadcast %cst_4 : f32 to vector<256x8xf32>
    %6 = arith.mulf %5, %2 : vector<256x8xf32>
    %7 = arith.select %4, %2, %6 : vector<256x8xi1>, vector<256x8xf32>
    %8 = arith.truncf %7 : vector<256x8xf32> to vector<256x8xbf16>
    %c0_5 = arith.constant 0 : index
    %c0_6 = arith.constant 0 : index
    %9 = vector.load %arg3[%c0_5, %c0_6] : memref<256x8xbf16, #tpu.memory_space<vmem>>, vector<256x8xbf16>
    tpu.vector_store %arg3[%c0_5, %c0_6], %8 {strides = array<i32>} : memref<256x8xbf16, #tpu.memory_space<vmem>>, vector<256x8xbf16>,
    return
  }
  func.func @transform_0(%arg0: i32) -> (i32, i32) {
    %c0_i32 = arith.constant 0 : i32
    %c0_i32_0 = arith.constant 0 : i32
    return %arg0, %c0_i32 : i32, i32
  }
  func.func @transform_1(%arg0: i32) -> (i32, i32) {
    %c0_i32 = arith.constant 0 : i32
    %c0_i32_0 = arith.constant 0 : i32
    %c0_i32_1 = arith.constant 0 : i32
    return %c0_i32, %c0_i32_0 : i32, i32
  }
  func.func @transform_2(%arg0: i32) -> (i32, i32) {
    %c0_i32 = arith.constant 0 : i32
    %c0_i32_0 = arith.constant 0 : i32
    return %arg0, %c0_i32 : i32, i32
  }
}

module attributes {stable_mosaic.version = 11 : i64} {
  func.func @_conv_stats_kernel(%arg0: i32, %arg1: memref<128x128xbf16, #tpu.memory_space<vmem>>, %arg2: memref<128x16xbf16, #tpu.memory_space<vmem>>, %arg3: memref<128x16xbf16, #tpu.memory_space<vmem>>, %arg4: memref<1x1x32xf32, #tpu.memory_space<vmem>>) attributes {dimension_semantics = [#tpu.dimension_semantics<parallel>], iteration_bounds = array<i64: 1>, scalar_prefetch = 0 : i64, scratch_operands = 0 : i64, tpu.core_type = #tpu.core_type<tc>, window_params = [{transform_indices = @transform_0, window_bounds = array<i64: 128, 128>}, {pipeline_mode = #tpu.pipeline_mode<synchronous>, transform_indices = @transform_1, window_bounds = array<i64: 128, 16>}, {transform_indices = @transform_2, window_bounds = array<i64: 128, 16>}, {transform_indices = @transform_3, window_bounds = array<i64: 1, 1, 32>}]} {
    %c0 = arith.constant 0 : index
    %c0_0 = arith.constant 0 : index
    %0 = vector.load %arg1[%c0, %c0_0] : memref<128x128xbf16, #tpu.memory_space<vmem>>, vector<128x128xbf16>
    %c0_1 = arith.constant 0 : index
    %c0_2 = arith.constant 0 : index
    %1 = vector.load %arg2[%c0_1, %c0_2] : memref<128x16xbf16, #tpu.memory_space<vmem>>, vector<128x16xbf16>
    %cst = arith.constant dense<0.000000e+00> : vector<128x16xf32>
    %2 = tpu.matmul %0, %1, %cst {dimension_numbers = #tpu.dot_dimension_numbers<[1], [0], [0], [1], [0, 0, 1, 1], [], []>} : vector<128x128xbf16>, vector<128x16xbf16>, vector<128x16xf32> -> vector<128x16xf32>
    %3 = arith.truncf %2 : vector<128x16xf32> to vector<128x16xbf16>
    %c0_3 = arith.constant 0 : index
    %c0_4 = arith.constant 0 : index
    %4 = vector.load %arg3[%c0_3, %c0_4] : memref<128x16xbf16, #tpu.memory_space<vmem>>, vector<128x16xbf16>
    tpu.vector_store %arg3[%c0_3, %c0_4], %3 {strides = array<i32>} : memref<128x16xbf16, #tpu.memory_space<vmem>>, vector<128x16xbf16>,
    %cst_5 = arith.constant dense<0.000000e+00> : vector<16xf32>
    %5 = vector.multi_reduction <add>, %2, %cst_5 [0] : vector<128x16xf32> to vector<16xf32>
    %6 = vector.shape_cast %5 : vector<16xf32> to vector<1x16xf32>
    %7 = arith.mulf %2, %2 : vector<128x16xf32>
    %cst_6 = arith.constant dense<0.000000e+00> : vector<16xf32>
    %8 = vector.multi_reduction <add>, %7, %cst_6 [0] : vector<128x16xf32> to vector<16xf32>
    %9 = vector.shape_cast %8 : vector<16xf32> to vector<1x16xf32>
    %10 = tpu.concatenate %6, %9 in 1 : vector<1x16xf32>, vector<1x16xf32> -> vector<1x32xf32>
    %c0_7 = arith.constant 0 : index
    %c0_8 = arith.constant 0 : index
    %c0_9 = arith.constant 0 : index
    %11 = vector.load %arg4[%c0_7, %c0_8, %c0_9] : memref<1x1x32xf32, #tpu.memory_space<vmem>>, vector<1x1x32xf32>
    %12 = vector.shape_cast %11 : vector<1x1x32xf32> to vector<1x32xf32>
    %13 = vector.shape_cast %10 : vector<1x32xf32> to vector<1x1x32xf32>
    tpu.vector_store %arg4[%c0_7, %c0_8, %c0_9], %13 {strides = array<i32>} : memref<1x1x32xf32, #tpu.memory_space<vmem>>, vector<1x1x32xf32>,
    return
  }
  func.func @transform_0(%arg0: i32) -> (i32, i32) {
    %c0_i32 = arith.constant 0 : i32
    %c0_i32_0 = arith.constant 0 : i32
    return %arg0, %c0_i32 : i32, i32
  }
  func.func @transform_1(%arg0: i32) -> (i32, i32) {
    %c0_i32 = arith.constant 0 : i32
    %c0_i32_0 = arith.constant 0 : i32
    %c0_i32_1 = arith.constant 0 : i32
    return %c0_i32, %c0_i32_0 : i32, i32
  }
  func.func @transform_2(%arg0: i32) -> (i32, i32) {
    %c0_i32 = arith.constant 0 : i32
    %c0_i32_0 = arith.constant 0 : i32
    return %arg0, %c0_i32 : i32, i32
  }
  func.func @transform_3(%arg0: i32) -> (i32, i32, i32) {
    %c0_i32 = arith.constant 0 : i32
    %c0_i32_0 = arith.constant 0 : i32
    %c0_i32_1 = arith.constant 0 : i32
    return %arg0, %c0_i32, %c0_i32_0 : i32, i32, i32
  }
}

module attributes {stable_mosaic.version = 11 : i64} {
  func.func @_conv_stats_kernel(%arg0: i32, %arg1: memref<32x256xbf16, #tpu.memory_space<vmem>>, %arg2: memref<256x32xbf16, #tpu.memory_space<vmem>>, %arg3: memref<32x32xbf16, #tpu.memory_space<vmem>>, %arg4: memref<1x1x64xf32, #tpu.memory_space<vmem>>) attributes {dimension_semantics = [#tpu.dimension_semantics<parallel>], iteration_bounds = array<i64: 1>, scalar_prefetch = 0 : i64, scratch_operands = 0 : i64, tpu.core_type = #tpu.core_type<tc>, window_params = [{transform_indices = @transform_0, window_bounds = array<i64: 32, 256>}, {pipeline_mode = #tpu.pipeline_mode<synchronous>, transform_indices = @transform_1, window_bounds = array<i64: 256, 32>}, {transform_indices = @transform_2, window_bounds = array<i64: 32, 32>}, {transform_indices = @transform_3, window_bounds = array<i64: 1, 1, 64>}]} {
    %c0 = arith.constant 0 : index
    %c0_0 = arith.constant 0 : index
    %0 = vector.load %arg1[%c0, %c0_0] : memref<32x256xbf16, #tpu.memory_space<vmem>>, vector<32x256xbf16>
    %c0_1 = arith.constant 0 : index
    %c0_2 = arith.constant 0 : index
    %1 = vector.load %arg2[%c0_1, %c0_2] : memref<256x32xbf16, #tpu.memory_space<vmem>>, vector<256x32xbf16>
    %cst = arith.constant dense<0.000000e+00> : vector<32x32xf32>
    %2 = tpu.matmul %0, %1, %cst {dimension_numbers = #tpu.dot_dimension_numbers<[1], [0], [0], [1], [0, 0, 1, 1], [], []>} : vector<32x256xbf16>, vector<256x32xbf16>, vector<32x32xf32> -> vector<32x32xf32>
    %3 = arith.truncf %2 : vector<32x32xf32> to vector<32x32xbf16>
    %c0_3 = arith.constant 0 : index
    %c0_4 = arith.constant 0 : index
    %4 = vector.load %arg3[%c0_3, %c0_4] : memref<32x32xbf16, #tpu.memory_space<vmem>>, vector<32x32xbf16>
    tpu.vector_store %arg3[%c0_3, %c0_4], %3 {strides = array<i32>} : memref<32x32xbf16, #tpu.memory_space<vmem>>, vector<32x32xbf16>,
    %cst_5 = arith.constant dense<0.000000e+00> : vector<32xf32>
    %5 = vector.multi_reduction <add>, %2, %cst_5 [0] : vector<32x32xf32> to vector<32xf32>
    %6 = vector.shape_cast %5 : vector<32xf32> to vector<1x32xf32>
    %7 = arith.mulf %2, %2 : vector<32x32xf32>
    %cst_6 = arith.constant dense<0.000000e+00> : vector<32xf32>
    %8 = vector.multi_reduction <add>, %7, %cst_6 [0] : vector<32x32xf32> to vector<32xf32>
    %9 = vector.shape_cast %8 : vector<32xf32> to vector<1x32xf32>
    %10 = tpu.concatenate %6, %9 in 1 : vector<1x32xf32>, vector<1x32xf32> -> vector<1x64xf32>
    %c0_7 = arith.constant 0 : index
    %c0_8 = arith.constant 0 : index
    %c0_9 = arith.constant 0 : index
    %11 = vector.load %arg4[%c0_7, %c0_8, %c0_9] : memref<1x1x64xf32, #tpu.memory_space<vmem>>, vector<1x1x64xf32>
    %12 = vector.shape_cast %11 : vector<1x1x64xf32> to vector<1x64xf32>
    %13 = vector.shape_cast %10 : vector<1x64xf32> to vector<1x1x64xf32>
    tpu.vector_store %arg4[%c0_7, %c0_8, %c0_9], %13 {strides = array<i32>} : memref<1x1x64xf32, #tpu.memory_space<vmem>>, vector<1x1x64xf32>,
    return
  }
  func.func @transform_0(%arg0: i32) -> (i32, i32) {
    %c0_i32 = arith.constant 0 : i32
    %c0_i32_0 = arith.constant 0 : i32
    return %arg0, %c0_i32 : i32, i32
  }
  func.func @transform_1(%arg0: i32) -> (i32, i32) {
    %c0_i32 = arith.constant 0 : i32
    %c0_i32_0 = arith.constant 0 : i32
    %c0_i32_1 = arith.constant 0 : i32
    return %c0_i32, %c0_i32_0 : i32, i32
  }
  func.func @transform_2(%arg0: i32) -> (i32, i32) {
    %c0_i32 = arith.constant 0 : i32
    %c0_i32_0 = arith.constant 0 : i32
    return %arg0, %c0_i32 : i32, i32
  }
  func.func @transform_3(%arg0: i32) -> (i32, i32, i32) {
    %c0_i32 = arith.constant 0 : i32
    %c0_i32_0 = arith.constant 0 : i32
    %c0_i32_1 = arith.constant 0 : i32
    return %arg0, %c0_i32, %c0_i32_0 : i32, i32, i32
  }
}

module attributes {stable_mosaic.version = 11 : i64} {
  func.func @_scale_shift_lrelu_kernel(%arg0: i32, %arg1: memref<8x64xbf16, #tpu.memory_space<vmem>>, %arg2: memref<1x64xf32, #tpu.memory_space<vmem>>, %arg3: memref<1x64xf32, #tpu.memory_space<vmem>>, %arg4: memref<8x64xbf16, #tpu.memory_space<vmem>>) attributes {dimension_semantics = [#tpu.dimension_semantics<parallel>], iteration_bounds = array<i64: 1>, scalar_prefetch = 0 : i64, scratch_operands = 0 : i64, tpu.core_type = #tpu.core_type<tc>, window_params = [{transform_indices = @transform_0, window_bounds = array<i64: 8, 64>}, {pipeline_mode = #tpu.pipeline_mode<synchronous>, transform_indices = @transform_1, window_bounds = array<i64: 1, 64>}, {pipeline_mode = #tpu.pipeline_mode<synchronous>, transform_indices = @transform_2, window_bounds = array<i64: 1, 64>}, {transform_indices = @transform_3, window_bounds = array<i64: 8, 64>}]} {
    %c0 = arith.constant 0 : index
    %c0_0 = arith.constant 0 : index
    %0 = vector.load %arg1[%c0, %c0_0] : memref<8x64xbf16, #tpu.memory_space<vmem>>, vector<8x64xbf16>
    %1 = arith.extf %0 : vector<8x64xbf16> to vector<8x64xf32>
    %c0_1 = arith.constant 0 : index
    %c0_2 = arith.constant 0 : index
    %2 = vector.load %arg2[%c0_1, %c0_2] : memref<1x64xf32, #tpu.memory_space<vmem>>, vector<1x64xf32>
    %3 = vector.broadcast %2 : vector<1x64xf32> to vector<8x64xf32>
    %4 = arith.mulf %1, %3 : vector<8x64xf32>
    %c0_3 = arith.constant 0 : index
    %c0_4 = arith.constant 0 : index
    %5 = vector.load %arg3[%c0_3, %c0_4] : memref<1x64xf32, #tpu.memory_space<vmem>>, vector<1x64xf32>
    %6 = vector.broadcast %5 : vector<1x64xf32> to vector<8x64xf32>
    %7 = arith.addf %4, %6 : vector<8x64xf32>
    %cst = arith.constant 0.000000e+00 : f32
    %8 = vector.broadcast %cst : f32 to vector<8x64xf32>
    %9 = arith.cmpf ogt, %7, %8 : vector<8x64xf32>
    %cst_5 = arith.constant 2.000000e-01 : f32
    %10 = vector.broadcast %cst_5 : f32 to vector<8x64xf32>
    %11 = arith.mulf %10, %7 : vector<8x64xf32>
    %12 = arith.select %9, %7, %11 : vector<8x64xi1>, vector<8x64xf32>
    %13 = arith.truncf %12 : vector<8x64xf32> to vector<8x64xbf16>
    %c0_6 = arith.constant 0 : index
    %c0_7 = arith.constant 0 : index
    %14 = vector.load %arg4[%c0_6, %c0_7] : memref<8x64xbf16, #tpu.memory_space<vmem>>, vector<8x64xbf16>
    tpu.vector_store %arg4[%c0_6, %c0_7], %13 {strides = array<i32>} : memref<8x64xbf16, #tpu.memory_space<vmem>>, vector<8x64xbf16>,
    return
  }
  func.func @transform_0(%arg0: i32) -> (i32, i32) {
    %c0_i32 = arith.constant 0 : i32
    %c0_i32_0 = arith.constant 0 : i32
    return %arg0, %c0_i32 : i32, i32
  }
  func.func @transform_1(%arg0: i32) -> (i32, i32) {
    %c0_i32 = arith.constant 0 : i32
    %c0_i32_0 = arith.constant 0 : i32
    %c0_i32_1 = arith.constant 0 : i32
    return %c0_i32, %c0_i32_0 : i32, i32
  }
  func.func @transform_2(%arg0: i32) -> (i32, i32) {
    %c0_i32 = arith.constant 0 : i32
    %c0_i32_0 = arith.constant 0 : i32
    %c0_i32_1 = arith.constant 0 : i32
    return %c0_i32, %c0_i32_0 : i32, i32
  }
  func.func @transform_3(%arg0: i32) -> (i32, i32) {
    %c0_i32 = arith.constant 0 : i32
    %c0_i32_0 = arith.constant 0 : i32
    return %arg0, %c0_i32 : i32, i32
  }
}

module attributes {stable_mosaic.version = 11 : i64} {
  func.func @_conv_stats_kernel(%arg0: i32, %arg1: memref<8x512xbf16, #tpu.memory_space<vmem>>, %arg2: memref<512x64xbf16, #tpu.memory_space<vmem>>, %arg3: memref<8x64xbf16, #tpu.memory_space<vmem>>, %arg4: memref<1x1x128xf32, #tpu.memory_space<vmem>>) attributes {dimension_semantics = [#tpu.dimension_semantics<parallel>], iteration_bounds = array<i64: 1>, scalar_prefetch = 0 : i64, scratch_operands = 0 : i64, tpu.core_type = #tpu.core_type<tc>, window_params = [{transform_indices = @transform_0, window_bounds = array<i64: 8, 512>}, {pipeline_mode = #tpu.pipeline_mode<synchronous>, transform_indices = @transform_1, window_bounds = array<i64: 512, 64>}, {transform_indices = @transform_2, window_bounds = array<i64: 8, 64>}, {transform_indices = @transform_3, window_bounds = array<i64: 1, 1, 128>}]} {
    %c0 = arith.constant 0 : index
    %c0_0 = arith.constant 0 : index
    %0 = vector.load %arg1[%c0, %c0_0] : memref<8x512xbf16, #tpu.memory_space<vmem>>, vector<8x512xbf16>
    %c0_1 = arith.constant 0 : index
    %c0_2 = arith.constant 0 : index
    %1 = vector.load %arg2[%c0_1, %c0_2] : memref<512x64xbf16, #tpu.memory_space<vmem>>, vector<512x64xbf16>
    %cst = arith.constant dense<0.000000e+00> : vector<8x64xf32>
    %2 = tpu.matmul %0, %1, %cst {dimension_numbers = #tpu.dot_dimension_numbers<[1], [0], [0], [1], [0, 0, 1, 1], [], []>} : vector<8x512xbf16>, vector<512x64xbf16>, vector<8x64xf32> -> vector<8x64xf32>
    %3 = arith.truncf %2 : vector<8x64xf32> to vector<8x64xbf16>
    %c0_3 = arith.constant 0 : index
    %c0_4 = arith.constant 0 : index
    %4 = vector.load %arg3[%c0_3, %c0_4] : memref<8x64xbf16, #tpu.memory_space<vmem>>, vector<8x64xbf16>
    tpu.vector_store %arg3[%c0_3, %c0_4], %3 {strides = array<i32>} : memref<8x64xbf16, #tpu.memory_space<vmem>>, vector<8x64xbf16>,
    %cst_5 = arith.constant dense<0.000000e+00> : vector<64xf32>
    %5 = vector.multi_reduction <add>, %2, %cst_5 [0] : vector<8x64xf32> to vector<64xf32>
    %6 = vector.shape_cast %5 : vector<64xf32> to vector<1x64xf32>
    %7 = arith.mulf %2, %2 : vector<8x64xf32>
    %cst_6 = arith.constant dense<0.000000e+00> : vector<64xf32>
    %8 = vector.multi_reduction <add>, %7, %cst_6 [0] : vector<8x64xf32> to vector<64xf32>
    %9 = vector.shape_cast %8 : vector<64xf32> to vector<1x64xf32>
    %10 = tpu.concatenate %6, %9 in 1 : vector<1x64xf32>, vector<1x64xf32> -> vector<1x128xf32>
    %c0_7 = arith.constant 0 : index
    %c0_8 = arith.constant 0 : index
    %c0_9 = arith.constant 0 : index
    %11 = vector.load %arg4[%c0_7, %c0_8, %c0_9] : memref<1x1x128xf32, #tpu.memory_space<vmem>>, vector<1x1x128xf32>
    %12 = vector.shape_cast %11 : vector<1x1x128xf32> to vector<1x128xf32>
    %13 = vector.shape_cast %10 : vector<1x128xf32> to vector<1x1x128xf32>
    tpu.vector_store %arg4[%c0_7, %c0_8, %c0_9], %13 {strides = array<i32>} : memref<1x1x128xf32, #tpu.memory_space<vmem>>, vector<1x1x128xf32>,
    return
  }
  func.func @transform_0(%arg0: i32) -> (i32, i32) {
    %c0_i32 = arith.constant 0 : i32
    %c0_i32_0 = arith.constant 0 : i32
    return %arg0, %c0_i32 : i32, i32
  }
  func.func @transform_1(%arg0: i32) -> (i32, i32) {
    %c0_i32 = arith.constant 0 : i32
    %c0_i32_0 = arith.constant 0 : i32
    %c0_i32_1 = arith.constant 0 : i32
    return %c0_i32, %c0_i32_0 : i32, i32
  }
  func.func @transform_2(%arg0: i32) -> (i32, i32) {
    %c0_i32 = arith.constant 0 : i32
    %c0_i32_0 = arith.constant 0 : i32
    return %arg0, %c0_i32 : i32, i32
  }
  func.func @transform_3(%arg0: i32) -> (i32, i32, i32) {
    %c0_i32 = arith.constant 0 : i32
    %c0_i32_0 = arith.constant 0 : i32
    %c0_i32_1 = arith.constant 0 : i32
    return %arg0, %c0_i32, %c0_i32_0 : i32, i32, i32
  }
}

</mosaic_0001>

<bundles_post_ra>
// kernel: shp_d_net256_forward.6
= control target key start
LH: loop header
LB: loop body
LE: loop exit
PB: predicated region body
PF: predicated region fallthrough
CT: control target
= control target key end

     0   :  { %s743_s12 = smov 0   ;;  %s838_s0 = inlined_call_operand.vmem [shape: bf16[2,27,1024], index: 0, kind: input, shape index: {}]   ;;  %s839_s1 = inlined_call_operand.vmem [shape: bf16[4,27], index: 1, kind: input, shape index: {}]   ;;  %s840_s2 = inlined_call_operand.vmem [shape: f32[4,1], index: 2, kind: input, shape index: {}]   ;;  %s841_s3 = inlined_call_operand.vmem [shape: bf16[2,4,1024], index: 3, kind: output, shape index: {}]  }
   0x1 LB: > { %s595_s13 = sadd.s32 4294967295, %s718_s12   ;;  %p599_p0 = scmp.ge.s32.totalorder %s718_s12, 1  ;;  %s718_s12 = sphi %s743_s12, %s13_s12  }
   0x2   : > { %p137_p1 = scmp.lt.s32.totalorder %s718_s12, 3 }
   0x4   : > { %p138_p2 = pnand %p599_p0, %p137_p1 }
   0x5   : > { %p161_p3 = scmp.lt.s32.totalorder (!%p138_p2), %s595_s13, 1 }
   0x6   : > { %141 = sbr.rel (%p138_p2) target bundleno = 474 (0x1da), region = 32 }
   0xb   : > { %vm271_vm0 = vcmask 1044480   ;;  %v189_v0 = vld [vmem:[%s840_s2] sm:$0xf]  ;;  %s843_s13 = smov (!%p161_p3, %s595_s13), 1  ;;  %vm272_vm1 = vcmask 1045504   ;;  %v720_v1 = vmov 65535  }
   0xc   : > { %v273_v2 = vsel %vm271_vm0, 4294967295, %v720_v1  ;;  %v721_v3 = vmov 0   ;;  %s678_s16 = sshll.u32 %s843_s13, 7  ;;  %v172_v43 = vld [vmem:[%s839_s1] sm:$0x3]  ;;  %vm267_vm2 = vcmask 220160  }
   0xd   : > { %707 = vset.pattern.permute.xlu0 %v721_v3  ;;  %s760_s19 = scalar_lea.vmem %s838_s0, %s678_s16  ;;  %v274_v4 = vsel %vm272_vm1, %v273_v2, 0  ;;  %vm403_vm3 = vcmask 1043456   ;;  %s679_s22 = sshll.u32 %s843_s13, 4  ;;  %vm520_vm0 = vcmask 1041408   ;;  %vm524_vm1 = vcmask 1045508  }
   0xe   : > { %192 = vperm.xlu0 %707, %v189_v0   ;;  %v638_v5 = vld [vmem:[%s760_s19 + $0x40] sm:$0xf]  ;;  %v688_v7 = vld [vmem:[%s760_s19 + $0x44] sm:$0xf]  ;;  %v646_v10 = vld [vmem:[%s760_s19 + $0x48] sm:$0xf]  ;;  %s170_s25 = scalar_lea.vmem %s841_s3, %s679_s22 }
   0xf   : > { %v692_v6 = vld [vmem:[%s760_s19 + $0x5c] sm:$0x30]  ;;  %v640_v9 = vld [vmem:[%s760_s19 + $0x60] sm:$0x30]  ;;  %v693_v11 = vld [vmem:[%s760_s19 + $0x64] sm:$0x30] }
  0x10   : > { %v639_v8 = vor.u32 %v692_v6, %v638_v5  ;;  %v643_v12 = vor.u32 %v688_v7, %v640_v9  ;;  %v647_v13 = vor.u32 %v693_v11, %v646_v10  ;;  %v689_v14 = vld [vmem:[%s760_s19 + $0x4c] sm:$0xf]  ;;  %v606_v16 = vld [vmem:[%s760_s19] sm:$0xf]  ;;  %v680_v20 = vld [vmem:[%s760_s19 + $0x4] sm:$0xf] }
  0x11   : > { %v648_v15 = vld [vmem:[%s760_s19 + $0x68] sm:$0x30]  ;;  %v684_v19 = vld [vmem:[%s760_s19 + $0x1c] sm:$0xf0]  ;;  %v608_v21 = vld [vmem:[%s760_s19 + $0x20] sm:$0xf0] }
  0x12   : > { %v276_v17 = vand.u32 %v639_v8, %v274_v4  ;;  %v651_v18 = vor.u32 %v689_v14, %v648_v15  ;;  %v279_v22 = vand.u32 %v643_v12, %v274_v4  ;;  %v282_v23 = vand.u32 %v647_v13, %v274_v4  ;;  %v614_v24 = vld [vmem:[%s760_s19 + $0x8] sm:$0xf]  ;;  %v681_v26 = vld [vmem:[%s760_s19 + $0xc] sm:$0xf]  ;;  %v662_v30 = vld [vmem:[%s760_s19 + $0x58] sm:$0xf] }
  0x13   : > { %v685_v25 = vld [vmem:[%s760_s19 + $0x24] sm:$0xf0]  ;;  %v607_v28 = vor.u32 %v684_v19, %v606_v16  ;;  %v616_v29 = vld [vmem:[%s760_s19 + $0x28] sm:$0xf0]  ;;  %v695_v31 = vld [vmem:[%s760_s19 + $0x74] sm:$0x30]  ;;  %v611_v32 = vor.u32 %v680_v20, %v608_v21 }
  0x14   : > { %305 = vmatpush.bf16.msra.mxu0 %v276_v17  ;;  %v285_v27 = vand.u32 %v651_v18, %v274_v4  ;;  %318 = vmatpush.bf16.msra.mxu1 %v279_v22  ;;  %v615_v33 = vor.u32 %v685_v25, %v614_v24  ;;  %v663_v34 = vor.u32 %v695_v31, %v662_v30  ;;  %v654_v35 = vld [vmem:[%s760_s19 + $0x50] sm:$0xf]  ;;  %v691_v37 = vld [vmem:[%s760_s19 + $0x5c] sm:$0xf]  ;;  %v690_v41 = vld [vmem:[%s760_s19 + $0x54] sm:$0xf] }
  0x15   : > { %331 = vmatpush.bf16.msra.mxu2 %v282_v23  ;;  %v694_v36 = vld [vmem:[%s760_s19 + $0x6c] sm:$0x30]  ;;  %v619_v38 = vor.u32 %v681_v26, %v616_v29  ;;  %v664_v40 = vld [vmem:[%s760_s19 + $0x78] sm:$0x30]  ;;  %v656_v42 = vld [vmem:[%s760_s19 + $0x70] sm:$0x30] }
  0x16   : > { %344 = vmatpush.bf16.msra.mxu3 %v285_v27  ;;  %v655_v39 = vor.u32 %v694_v36, %v654_v35  ;;  %v294_v44 = vand.u32 %v663_v34, %v274_v4  ;;  %v667_v45 = vor.u32 %v691_v37, %v664_v40  ;;  %v659_v46 = vor.u32 %v690_v41, %v656_v42  ;;  %v630_v47 = vld [vmem:[%s760_s19 + $0x18] sm:$0xf]  ;;  %v683_v49 = vld [vmem:[%s760_s19 + $0x1c] sm:$0xf]  ;;  %v622_v55 = vld [vmem:[%s760_s19 + $0x10] sm:$0xf] }
  0x17   : > { %v687_v48 = vld [vmem:[%s760_s19 + $0x34] sm:$0xf0]  ;;  %v632_v50 = vld [vmem:[%s760_s19 + $0x38] sm:$0xf0]  ;;  %v686_v56 = vld [vmem:[%s760_s19 + $0x2c] sm:$0xf0] }
  0x18   : > { %306 = vmatpush.bf16.msra.mxu0 %v607_v28  ;;  %319 = vmatpush.bf16.msra.mxu1 %v611_v32  ;;  %v288_v51 = vand.u32 %v655_v39, %v274_v4  ;;  %v297_v52 = vand.u32 %v667_v45, %v274_v4  ;;  %v291_v53 = vand.u32 %v659_v46, %v274_v4  ;;  %v682_v58 = vld [vmem:[%s760_s19 + $0x14] sm:$0xf] }
  0x19   : > { %332 = vmatpush.bf16.msra.mxu2 %v615_v33  ;;  %v631_v54 = vor.u32 %v687_v48, %v630_v47  ;;  %v635_v57 = vor.u32 %v683_v49, %v632_v50  ;;  %v624_v59 = vld [vmem:[%s760_s19 + $0x30] sm:$0xf0]  ;;  %v623_v60 = vor.u32 %v686_v56, %v622_v55 }
  0x1a   : > { %345 = vmatpush.bf16.msra.mxu3 %v619_v38  ;;  %v627_v61 = vor.u32 %v682_v58, %v624_v59  ;;  %v722_v38 = vmov 1024.0  }
  0x1b   : > { %668 = vmatmul.msk.bf16.vlgmr.msra.gmra.mxu0 %vm267_vm2, %v172_v43  ;;  %669 = vmatmul.msk.bf16.vlgmr.msra.gmra.mxu1 %vm267_vm2, %v172_v43  ;;  %708 = vrcp.f32 %v722_v38 }
  0x1c   : > { %670 = vmatmul.msk.bf16.vlgmr.msra.gmra.mxu2 %vm267_vm2, %v172_v43  ;;  %357 = vmatpush.bf16.msrb.mxu0 %v288_v51 }
  0x1d   : > { %383 = vmatpush.bf16.msrb.mxu2 %v294_v44  ;;  %671 = vmatmul.msk.bf16.vlgmr.msra.gmra.mxu3 %vm267_vm2, %v172_v43 }
  0x1e   : > { %396 = vmatpush.bf16.msrb.mxu3 %v297_v52  ;;  %370 = vmatpush.bf16.msrb.mxu1 %v291_v53 }
  0x20   : > { %358 = vmatpush.bf16.msrb.mxu0 %v623_v60 }
  0x21   : > { %384 = vmatpush.bf16.msrb.mxu2 %v631_v54  ;;  %v709_v39 = vpop.eup %708 }
  0x22   : > { %397 = vmatpush.bf16.msrb.mxu3 %v635_v57  ;;  %371 = vmatpush.bf16.msrb.mxu1 %v627_v61  ;;  %v422_v40 = vmul.f32 1024.0, %v709_v39  ;;  %vm426_vm4 = vweird.f32 %v709_v39 }
  0x24   : > { %v423_v41 = vsub.f32 1.0, %v422_v40 }
  0x26   : > { %v424_v42 = vmul.f32 %v709_v39, %v423_v41 }
  0x2b   : > { %672 = vmatmul.msk.bf16.vlgmr.msrb.gmra.mxu0 %vm267_vm2, %v172_v43  ;;  %673 = vmatmul.msk.bf16.vlgmr.msrb.gmra.mxu1 %vm267_vm2, %v172_v43 }
  0x2c   : > { %674 = vmatmul.msk.bf16.vlgmr.msrb.gmra.mxu2 %vm267_vm2, %v172_v43 }
  0x2d   : > { %675 = vmatmul.msk.bf16.vlgmr.msrb.gmra.mxu3 %vm267_vm2, %v172_v43  ;;  %v425_v43 = vadd.f32 %v709_v39, %v424_v42 }
  0x2f   : > { %v427_v44 = vsel %vm426_vm4, %v709_v39, %v425_v43 }
  0x80   : > { %v193_v0 = vpop.permute.xlu0 %192 }
  0x98   : > { %v308_v62 = vpop.f32.mrf.mxu0  ;;  %v321_v63 = vpop.f32.mrf.mxu1 }
  0x99   : > { %v309_v1 = vadd.f32 %v308_v62, %v193_v0  ;;  %v322_v2 = vadd.f32 %v321_v63, %v193_v0 }
  0x9b   : > { %v404_v8 = vsel %vm403_vm3, %v309_v1, 0.0  ;;  %v405_v9 = vsel %vm403_vm3, %v322_v2, 0.0 }
  0x9c   : > { %v406_v12 = vadd.f32 %v405_v9, %v404_v8 }
  0x9f   : > { %v334_v3 = vpop.f32.mrf.mxu2 }
  0xa0   : > { %v335_v4 = vadd.f32 %v334_v3, %v193_v0  ;;  %v347_v5 = vpop.f32.mrf.mxu3  ;;  %v310_v6 = vpop.f32.mrf.mxu0 }
  0xa1   : > { %v323_v7 = vpop.f32.mrf.mxu1  ;;  %v348_v11 = vadd.f32 %v347_v5, %v193_v0 }
  0xa2   : > { %v407_v10 = vsel %vm403_vm3, %v335_v4, 0.0 }
  0xa3   : > { %v408_v13 = vadd.f32 %v407_v10, %v406_v12  ;;  %v409_v15 = vsel %vm403_vm3, %v348_v11, 0.0 }
  0xa5   : > { %v410_v20 = vadd.f32 %v409_v15, %v408_v13 }
  0xa7   : > { %v336_v14 = vpop.f32.mrf.mxu2 }
  0xa8   : > { %v349_v16 = vpop.f32.mrf.mxu3  ;;  %v360_v17 = vpop.f32.mrf.mxu0 }
  0xa9   : > { %v361_v18 = vadd.f32 %v360_v17, %v193_v0  ;;  %v373_v19 = vpop.f32.mrf.mxu1 }
  0xaa   : > { %v374_v22 = vadd.f32 %v373_v19, %v193_v0 }
  0xab   : > { %v411_v21 = vsel %vm403_vm3, %v361_v18, 0.0 }
  0xac   : > { %v412_v23 = vadd.f32 %v411_v21, %v410_v20  ;;  %v413_v25 = vsel %vm403_vm3, %v374_v22, 0.0 }
  0xae   : > { %v414_v29 = vadd.f32 %v413_v25, %v412_v23 }
  0xaf   : > { %v386_v24 = vpop.f32.mrf.mxu2 }
  0xb0   : > { %v387_v26 = vadd.f32 %v386_v24, %v193_v0  ;;  %v399_v27 = vpop.f32.mrf.mxu3  ;;  %v362_v28 = vpop.f32.mrf.mxu0 }
  0xb1   : > { %v400_v30 = vadd.f32 %v399_v27, %v193_v0  ;;  %v375_v31 = vpop.f32.mrf.mxu1 }
  0xb2   : > { %v415_v32 = vsel %vm403_vm3, %v387_v26, 0.0 }
  0xb3   : > { %v416_v33 = vadd.f32 %v415_v32, %v414_v29  ;;  %v417_v34 = vsel %vm403_vm3, %v400_v30, 0.0 }
  0xb5   : > { %v418_v35 = vadd.f32 %v417_v34, %v416_v33 }
  0xb7   : > { %v388_v36 = vpop.f32.mrf.mxu2  ;;  %419 = vadd.xlane.f32.xlu0 %v418_v35 }
  0xb8   : > { %v401_v37 = vpop.f32.mrf.mxu3 }
 0x12a   : > { %v420_v45 = vpop.xlane.xlu0 %419 }
 0x12b   : > { %v428_v46 = vmul.f32 %v427_v44, %v420_v45 }
 0x12d   : > { %v429_v47 = vsub.f32 %v309_v1, %v428_v46  ;;  %v430_v48 = vsub.f32 %v322_v2, %v428_v46  ;;  %v431_v49 = vsub.f32 %v335_v4, %v428_v46  ;;  %v432_v50 = vsub.f32 %v348_v11, %v428_v46 }
 0x12e   : > { %v433_v51 = vsub.f32 %v361_v18, %v428_v46  ;;  %v434_v55 = vsub.f32 %v374_v22, %v428_v46  ;;  %v435_v60 = vsub.f32 %v387_v26, %v428_v46  ;;  %v436_v0 = vsub.f32 %v400_v30, %v428_v46 }
 0x12f   : > { %v437_v52 = vmul.f32 %v429_v47, %v429_v47  ;;  %v438_v53 = vmul.f32 %v430_v48, %v430_v48  ;;  %v439_v54 = vmul.f32 %v431_v49, %v431_v49  ;;  %v440_v56 = vmul.f32 %v432_v50, %v432_v50 }
 0x130   : > { %v441_v61 = vmul.f32 %v433_v51, %v433_v51  ;;  %v442_v1 = vmul.f32 %v434_v55, %v434_v55  ;;  %v443_v4 = vmul.f32 %v435_v60, %v435_v60  ;;  %v444_v7 = vmul.f32 %v436_v0, %v436_v0 }
 0x131   : > { %v445_v57 = vsel %vm403_vm3, %v437_v52, 0.0  ;;  %v446_v58 = vsel %vm403_vm3, %v438_v53, 0.0  ;;  %v448_v62 = vsel %vm403_vm3, %v439_v54, 0.0  ;;  %v450_v2 = vsel %vm403_vm3, %v440_v56, 0.0 }
 0x132   : > { %v447_v59 = vadd.f32 %v446_v58, %v445_v57  ;;  %v452_v5 = vsel %vm403_vm3, %v441_v61, 0.0  ;;  %v454_v8 = vsel %vm403_vm3, %v442_v1, 0.0  ;;  %v456_v10 = vsel %vm403_vm3, %v443_v4, 0.0 }
 0x133   : > { %v458_v12 = vsel %vm403_vm3, %v444_v7, 0.0 }
 0x134   : > { %v449_v63 = vadd.f32 %v448_v62, %v447_v59 }
 0x136   : > { %v451_v3 = vadd.f32 %v450_v2, %v449_v63 }
 0x138   : > { %v453_v6 = vadd.f32 %v452_v5, %v451_v3 }
 0x13a   : > { %v455_v9 = vadd.f32 %v454_v8, %v453_v6 }
 0x13c   : > { %v457_v11 = vadd.f32 %v456_v10, %v455_v9 }
 0x13e   : > { %v459_v13 = vadd.f32 %v458_v12, %v457_v11 }
 0x140   : > { %460 = vadd.xlane.f32.xlu1 %v459_v13 }
 0x1b3   : > { %v461_v14 = vpop.xlane.xlu1 %460 }
 0x1b4   : > { %v462_v15 = vmul.f32 %v461_v14, %v427_v44 }
 0x1b6   : > { %v463_v16 = vadd.f32 1e-05, %v462_v15 }
 0x1b8   : > { %710 = vrsqrt.f32 %v463_v16  ;;  %vm470_vm6 = vweird.f32 %v463_v16 }
 0x1be   : > { %v711_v17 = vpop.eup %710 }
 0x1bf   : > { %v465_v18 = vmul.f32 %v711_v17, %v463_v16  ;;  %vm471_vm5 = vweird.f32 %v711_v17 }
 0x1c0   : > { %vm472_vm7 = vmor %vm470_vm6, %vm471_vm5 }
 0x1c1   : > { %v466_v19 = vmul.f32 %v711_v17, %v465_v18 }
 0x1c3   : > { %v467_v20 = vmul.f32 0.5, %v466_v19 }
 0x1c5   : > { %v468_v21 = vsub.f32 1.5, %v467_v20 }
 0x1c7   : > { %v469_v22 = vmul.f32 %v711_v17, %v468_v21 }
 0x1c9   : > { %v473_v23 = vsel %vm472_vm7, %v711_v17, %v469_v22 }
 0x1ca   : > { %v474_v24 = vmul.f32 %v473_v23, %v429_v47  ;;  %v475_v25 = vmul.f32 %v473_v23, %v430_v48  ;;  %v476_v26 = vmul.f32 %v473_v23, %v431_v49  ;;  %v477_v27 = vmul.f32 %v473_v23, %v432_v50 }
 0x1cb   : > { %v478_v28 = vmul.f32 %v473_v23, %v433_v51  ;;  %v479_v29 = vmul.f32 %v473_v23, %v434_v55  ;;  %v480_v30 = vmul.f32 %v473_v23, %v435_v60  ;;  %v481_v31 = vmul.f32 %v473_v23, %v436_v0 }
 0x1cc   : > { %vm482_vm8 = vcmp.gt.f32.partialorder %v474_v24, 0.0  ;;  %vm483_vm9 = vcmp.gt.f32.partialorder %v475_v25, 0.0  ;;  %vm484_vm10 = vcmp.gt.f32.partialorder %v476_v26, 0.0  ;;  %vm485_vm11 = vcmp.gt.f32.partialorder %v477_v27, 0.0 }
 0x1cd   : > { %vm486_vm12 = vcmp.gt.f32.partialorder %v478_v28, 0.0  ;;  %vm487_vm13 = vcmp.gt.f32.partialorder %v479_v29, 0.0  ;;  %vm488_vm14 = vcmp.gt.f32.partialorder %v480_v30, 0.0  ;;  %vm489_vm15 = vcmp.gt.f32.partialorder %v481_v31, 0.0 }
 0x1ce   : > { %v490_v32 = vmul.f32 0.2, %v474_v24  ;;  %v491_v33 = vmul.f32 0.2, %v475_v25  ;;  %v492_v34 = vmul.f32 0.2, %v476_v26 }
 0x1cf   : > { %v493_v35 = vmul.f32 0.2, %v477_v27  ;;  %v494_v36 = vmul.f32 0.2, %v478_v28  ;;  %v495_v37 = vmul.f32 0.2, %v479_v29 }
 0x1d0   : > { %v496_v38 = vmul.f32 0.2, %v480_v30  ;;  %v497_v39 = vmul.f32 0.2, %v481_v31  ;;  %v498_v40 = vsel %vm482_vm8, %v474_v24, %v490_v32  ;;  %v499_v41 = vsel %vm483_vm9, %v475_v25, %v491_v33 }
 0x1d1   : > { %v500_v42 = vsel %vm484_vm10, %v476_v26, %v492_v34  ;;  %v501_v43 = vsel %vm485_vm11, %v477_v27, %v493_v35  ;;  %v502_v44 = vsel %vm486_vm12, %v478_v28, %v494_v36  ;;  %v503_v45 = vsel %vm487_vm13, %v479_v29, %v495_v37 }
 0x1d2   : > { %v504_v46 = vsel %vm488_vm14, %v480_v30, %v496_v38  ;;  %v505_v47 = vsel %vm489_vm15, %v481_v31, %v497_v39  ;;  %v506_v48 = vpack.c.bf16 %v499_v41, %v498_v40  ;;  %v507_v49 = vpack.c.bf16 %v501_v43, %v500_v42 }
 0x1d3   : > { %v508_v50 = vpack.c.bf16 %v503_v45, %v502_v44  ;;  %v509_v51 = vpack.c.bf16 %v505_v47, %v504_v46 }
 0x1d4   : > { %v514_v52 = vrot.slane %v506_v48, 2  ;;  %v515_v53 = vrot.slane %v507_v49, 4  ;;  %v516_v54 = vrot.slane %v507_v49, 6 }
 0x1d5   : > { %v517_v55 = vrot.slane %v508_v50, 2  ;;  %v518_v56 = vrot.slane %v509_v51, 4  ;;  %v519_v57 = vrot.slane %v509_v51, 6 }
 0x1d6   : > { %v523_v58 = vsel %vm520_vm0, %v506_v48, %v514_v52  ;;  %v527_v59 = vsel %vm524_vm1, %v515_v53, %v516_v54 }
 0x1d7   : > { %v528_v60 = vsel %vm403_vm3, %v523_v58, %v527_v59  ;;  %v531_v61 = vsel %vm520_vm0, %v508_v50, %v517_v55  ;;  %v534_v62 = vsel %vm524_vm1, %v518_v56, %v519_v57 }
 0x1d8   : > { %v535_v63 = vsel %vm403_vm3, %v531_v61, %v534_v62  ;;  %538 = vst [vmem:[%s170_s25] sm:$0xff] %v528_v60 }
 0x1d9   : > { %539 = vst [vmem:[%s170_s25 + $0x8] sm:$0xff] %v535_v63 }
 0x1da PF: > { %s13_s12 = sadd.s32 1, %s718_s12  }
 0x1db   : > { %p10_p4 = scmp.ge.s32.totalorder %s13_s12, 4  }
 0x1dd   :  { %12 = sbr.rel (!%p10_p4) target bundleno = 1 (0x1), region = 62 }

// kernel: shp_d_net256_forward.7
= control target key start
LH: loop header
LB: loop body
LE: loop exit
PB: predicated region body
PF: predicated region fallthrough
CT: control target
= control target key end

     0   :  { %s831_s9 = smov 0   ;;  %s963_s0 = inlined_call_operand.vmem [shape: bf16[512,128], index: 0, kind: input, shape index: {}]   ;;  %s964_s1 = inlined_call_operand.vmem [shape: bf16[128,8], index: 1, kind: input, shape index: {}]   ;;  %s965_s2 = inlined_call_operand.vmem [shape: bf16[512,8], index: 2, kind: output, shape index: {}]  }
   0x1 LB: > { %s645_s10 = sadd.s32 4294967295, %s814_s9   ;;  %p649_p0 = scmp.ge.s32.totalorder %s814_s9, 1  ;;  %s814_s9 = sphi %s831_s9, %s12_s9  }
   0x2   : > { %p113_p1 = scmp.lt.s32.totalorder %s814_s9, 3 }
   0x4   : > { %p114_p2 = pnand %p649_p0, %p113_p1 }
   0x5   : > { %s650_s19 = sshll.u32 (!%p114_p2), %s645_s10, 5 }
   0x6   : > { %117 = sbr.rel (%p114_p2) target bundleno = 239 (0xef), region = 28  ;;  %p136_p3 = scmp.lt.s32.totalorder (!%p114_p2), %s650_s19, 63 }
   0xb   : > { %v775_v0 = vld [vmem:[%s964_s1 + $0x38] sm:$0xff]  ;;  %v774_v1 = vld [vmem:[%s964_s1 + $0x30] sm:$0xff]  ;;  %v773_v2 = vld [vmem:[%s964_s1 + $0x28] sm:$0xff]  ;;  %s967_s19 = smov (!%p136_p3, %s650_s19), 63  ;;  %vm556_vm2 = vcmask 60416  }
   0xc   : > { %339 = vmatpush.bf16.msra.mxu0 %v775_v0  ;;  %776 = vmatpush.bf16.msra.mxu1 %v775_v0  ;;  %v772_v3 = vld [vmem:[%s964_s1 + $0x20] sm:$0xff]  ;;  %v771_v4 = vld [vmem:[%s964_s1 + $0x18] sm:$0xff]  ;;  %v770_v5 = vld [vmem:[%s964_s1 + $0x10] sm:$0xff]  ;;  %s651_s26 = sshll.u32 %s967_s19, 2 }
   0xd   : > { %777 = vmatpush.bf16.msra.mxu2 %v775_v0  ;;  %778 = vmatpush.bf16.msra.mxu3 %v775_v0  ;;  %v769_v6 = vld [vmem:[%s964_s1 + $0x8] sm:$0xff]  ;;  %v768_v7 = vld [vmem:[%s964_s1] sm:$0xff]  ;;  %s871_s3 = scalar_lea.vmem %s963_s0, %s651_s26  ;;  %s894_s6 = scalar_lea.vmem %s965_s2, %s651_s26 }
   0xe   : > { %v752_v8 = vld [vmem:[%s871_s3] sm:$0xff]  ;;  %v753_v12 = vld [vmem:[%s871_s3 + $0x8] sm:$0xff]  ;;  %v754_v16 = vld [vmem:[%s871_s3 + $0x10] sm:$0xff] }
   0xf   : > { %v756_v9 = vld [vmem:[%s871_s3 + $0x20] sm:$0xff]  ;;  %v757_v13 = vld [vmem:[%s871_s3 + $0x28] sm:$0xff]  ;;  %v758_v17 = vld [vmem:[%s871_s3 + $0x30] sm:$0xff] }
  0x10   : > { %340 = vmatpush.bf16.msra.mxu0 %v774_v1  ;;  %779 = vmatpush.bf16.msra.mxu1 %v774_v1  ;;  %v760_v10 = vld [vmem:[%s871_s3 + $0x40] sm:$0xff]  ;;  %v761_v14 = vld [vmem:[%s871_s3 + $0x48] sm:$0xff]  ;;  %v762_v18 = vld [vmem:[%s871_s3 + $0x50] sm:$0xff] }
  0x11   : > { %780 = vmatpush.bf16.msra.mxu2 %v774_v1  ;;  %781 = vmatpush.bf16.msra.mxu3 %v774_v1  ;;  %v764_v11 = vld [vmem:[%s871_s3 + $0x60] sm:$0xff]  ;;  %v765_v15 = vld [vmem:[%s871_s3 + $0x68] sm:$0xff]  ;;  %v766_v19 = vld [vmem:[%s871_s3 + $0x70] sm:$0xff] }
  0x12   : > { %v755_v20 = vld [vmem:[%s871_s3 + $0x18] sm:$0xff] }
  0x13   : > { %v759_v21 = vld [vmem:[%s871_s3 + $0x38] sm:$0xff] }
  0x14   : > { %341 = vmatpush.bf16.msra.mxu0 %v773_v2  ;;  %782 = vmatpush.bf16.msra.mxu1 %v773_v2  ;;  %v763_v22 = vld [vmem:[%s871_s3 + $0x58] sm:$0xff] }
  0x15   : > { %783 = vmatpush.bf16.msra.mxu2 %v773_v2  ;;  %784 = vmatpush.bf16.msra.mxu3 %v773_v2  ;;  %v767_v23 = vld [vmem:[%s871_s3 + $0x78] sm:$0xff] }
  0x18   : > { %342 = vmatpush.bf16.msra.mxu0 %v772_v3  ;;  %785 = vmatpush.bf16.msra.mxu1 %v772_v3 }
  0x19   : > { %786 = vmatpush.bf16.msra.mxu2 %v772_v3  ;;  %787 = vmatpush.bf16.msra.mxu3 %v772_v3 }
  0x1c   : > { %343 = vmatpush.bf16.msra.mxu0 %v771_v4  ;;  %788 = vmatpush.bf16.msra.mxu1 %v771_v4 }
  0x1d   : > { %789 = vmatpush.bf16.msra.mxu2 %v771_v4  ;;  %790 = vmatpush.bf16.msra.mxu3 %v771_v4 }
  0x20   : > { %344 = vmatpush.bf16.msra.mxu0 %v770_v5  ;;  %791 = vmatpush.bf16.msra.mxu1 %v770_v5 }
  0x21   : > { %792 = vmatpush.bf16.msra.mxu2 %v770_v5  ;;  %793 = vmatpush.bf16.msra.mxu3 %v770_v5 }
  0x24   : > { %345 = vmatpush.bf16.msra.mxu0 %v769_v6  ;;  %794 = vmatpush.bf16.msra.mxu1 %v769_v6 }
  0x25   : > { %795 = vmatpush.bf16.msra.mxu2 %v769_v6  ;;  %796 = vmatpush.bf16.msra.mxu3 %v769_v6 }
  0x28   : > { %346 = vmatpush.bf16.msra.mxu0 %v768_v7  ;;  %797 = vmatpush.bf16.msra.mxu1 %v768_v7 }
  0x29   : > { %798 = vmatpush.bf16.msra.mxu2 %v768_v7  ;;  %799 = vmatpush.bf16.msra.mxu3 %v768_v7 }
  0x2b   : > { %347 = vmatmul.bf16.vlgmr.msra.gmra.mxu0 %v752_v8  ;;  %367 = vmatmul.bf16.vlgmr.msra.gmra.mxu1 %v756_v9 }
  0x2c   : > { %387 = vmatmul.bf16.vlgmr.msra.gmra.mxu2 %v760_v10  ;;  %407 = vmatmul.bf16.vlgmr.msra.gmra.mxu3 %v764_v11 }
  0x3b   : > { %352 = vmatmul.bf16.gmra.mxu0 %v753_v12  ;;  %372 = vmatmul.bf16.gmra.mxu1 %v757_v13 }
  0x3c   : > { %392 = vmatmul.bf16.gmra.mxu2 %v761_v14  ;;  %412 = vmatmul.bf16.gmra.mxu3 %v765_v15 }
  0x4b   : > { %357 = vmatmul.bf16.gmra.mxu0 %v754_v16  ;;  %377 = vmatmul.bf16.gmra.mxu1 %v758_v17 }
  0x4c   : > { %397 = vmatmul.bf16.gmra.mxu2 %v762_v18  ;;  %417 = vmatmul.bf16.gmra.mxu3 %v766_v19 }
  0x5b   : > { %362 = vmatmul.bf16.gmra.mxu0 %v755_v20  ;;  %382 = vmatmul.bf16.gmra.mxu1 %v759_v21 }
  0x5c   : > { %402 = vmatmul.bf16.gmra.mxu2 %v763_v22  ;;  %422 = vmatmul.bf16.gmra.mxu3 %v767_v23 }
  0xa8   : > { %v348_v24 = vpop.f32.mrf.mxu0  ;;  %v368_v25 = vpop.f32.mrf.mxu1 }
  0xa9   : > { %vm428_vm0 = vcmp.gt.f32.partialorder %v348_v24, 0.0  ;;  %v460_v26 = vmul.f32 0.2, %v348_v24  ;;  %vm436_vm1 = vcmp.gt.f32.partialorder %v368_v25, 0.0  ;;  %v468_v27 = vmul.f32 0.2, %v368_v25 }
  0xab   : > { %v492_v28 = vsel %vm428_vm0, %v348_v24, %v460_v26  ;;  %v500_v29 = vsel %vm436_vm1, %v368_v25, %v468_v27 }
  0xac   : > { %v524_v30 = vpack.c.bf16 %v492_v28, %v492_v28  ;;  %v532_v31 = vpack.c.bf16 %v500_v29, %v500_v29 }
  0xae   : > { %557 = vst.msk [vmem:[%s894_s6] sm:$0xf] %vm556_vm2, %v524_v30 }
  0xaf   : > { %565 = vst.msk [vmem:[%s894_s6 + $0x20] sm:$0xf] %vm556_vm2, %v532_v31  ;;  %v388_v32 = vpop.f32.mrf.mxu2  ;;  %v408_v33 = vpop.f32.mrf.mxu3 }
  0xb0   : > { %vm444_vm3 = vcmp.gt.f32.partialorder %v388_v32, 0.0  ;;  %v476_v34 = vmul.f32 0.2, %v388_v32  ;;  %vm452_vm4 = vcmp.gt.f32.partialorder %v408_v33, 0.0  ;;  %v484_v35 = vmul.f32 0.2, %v408_v33  ;;  %v350_v36 = vpop.f32.mrf.mxu0  ;;  %v370_v37 = vpop.f32.mrf.mxu1 }
  0xb1   : > { %vm429_vm5 = vcmp.gt.f32.partialorder %v350_v36, 0.0  ;;  %v461_v38 = vmul.f32 0.2, %v350_v36  ;;  %vm437_vm6 = vcmp.gt.f32.partialorder %v370_v37, 0.0  ;;  %v469_v39 = vmul.f32 0.2, %v370_v37 }
  0xb2   : > { %v508_v40 = vsel %vm444_vm3, %v388_v32, %v476_v34  ;;  %v516_v41 = vsel %vm452_vm4, %v408_v33, %v484_v35 }
  0xb3   : > { %v540_v42 = vpack.c.bf16 %v508_v40, %v508_v40  ;;  %v548_v43 = vpack.c.bf16 %v516_v41, %v516_v41  ;;  %v493_v44 = vsel %vm429_vm5, %v350_v36, %v461_v38  ;;  %v501_v45 = vsel %vm437_vm6, %v370_v37, %v469_v39 }
  0xb4   : > { %v525_v46 = vpack.c.bf16 %v493_v44, %v493_v44  ;;  %v533_v47 = vpack.c.bf16 %v501_v45, %v501_v45 }
  0xb5   : > { %573 = vst.msk [vmem:[%s894_s6 + $0x40] sm:$0xf] %vm556_vm2, %v540_v42 }
  0xb6   : > { %581 = vst.msk [vmem:[%s894_s6 + $0x60] sm:$0xf] %vm556_vm2, %v548_v43 }
  0xb7   : > { %558 = vst.msk [vmem:[%s894_s6 + $0x4] sm:$0xf] %vm556_vm2, %v525_v46  ;;  %v390_v48 = vpop.f32.mrf.mxu2  ;;  %v410_v49 = vpop.f32.mrf.mxu3 }
  0xb8   : > { %566 = vst.msk [vmem:[%s894_s6 + $0x24] sm:$0xf] %vm556_vm2, %v533_v47  ;;  %vm445_vm7 = vcmp.gt.f32.partialorder %v390_v48, 0.0  ;;  %v477_v50 = vmul.f32 0.2, %v390_v48  ;;  %vm453_vm8 = vcmp.gt.f32.partialorder %v410_v49, 0.0  ;;  %v353_v51 = vpop.f32.mrf.mxu0  ;;  %v373_v52 = vpop.f32.mrf.mxu1 }
  0xb9   : > { %v485_v53 = vmul.f32 0.2, %v410_v49  ;;  %vm430_vm9 = vcmp.gt.f32.partialorder %v353_v51, 0.0  ;;  %v462_v54 = vmul.f32 0.2, %v353_v51  ;;  %vm438_vm10 = vcmp.gt.f32.partialorder %v373_v52, 0.0 }
  0xba   : > { %v509_v55 = vsel %vm445_vm7, %v390_v48, %v477_v50  ;;  %v470_v56 = vmul.f32 0.2, %v373_v52 }
  0xbb   : > { %v541_v57 = vpack.c.bf16 %v509_v55, %v509_v55  ;;  %v517_v58 = vsel %vm453_vm8, %v410_v49, %v485_v53  ;;  %v494_v59 = vsel %vm430_vm9, %v353_v51, %v462_v54 }
  0xbc   : > { %v549_v60 = vpack.c.bf16 %v517_v58, %v517_v58  ;;  %v526_v61 = vpack.c.bf16 %v494_v59, %v494_v59  ;;  %v502_v62 = vsel %vm438_vm10, %v373_v52, %v470_v56 }
  0xbd   : > { %574 = vst.msk [vmem:[%s894_s6 + $0x44] sm:$0xf] %vm556_vm2, %v541_v57  ;;  %v534_v63 = vpack.c.bf16 %v502_v62, %v502_v62 }
  0xbe   : > { %582 = vst.msk [vmem:[%s894_s6 + $0x64] sm:$0xf] %vm556_vm2, %v549_v60 }
  0xbf   : > { %559 = vst.msk [vmem:[%s894_s6 + $0x8] sm:$0xf] %vm556_vm2, %v526_v61  ;;  %v393_v0 = vpop.f32.mrf.mxu2  ;;  %v413_v1 = vpop.f32.mrf.mxu3 }
  0xc0   : > { %567 = vst.msk [vmem:[%s894_s6 + $0x28] sm:$0xf] %vm556_vm2, %v534_v63  ;;  %vm446_vm11 = vcmp.gt.f32.partialorder %v393_v0, 0.0  ;;  %v478_v2 = vmul.f32 0.2, %v393_v0  ;;  %vm454_vm12 = vcmp.gt.f32.partialorder %v413_v1, 0.0  ;;  %v355_v3 = vpop.f32.mrf.mxu0  ;;  %v375_v4 = vpop.f32.mrf.mxu1 }
  0xc1   : > { %v486_v5 = vmul.f32 0.2, %v413_v1  ;;  %vm431_vm13 = vcmp.gt.f32.partialorder %v355_v3, 0.0  ;;  %v463_v6 = vmul.f32 0.2, %v355_v3  ;;  %vm439_vm14 = vcmp.gt.f32.partialorder %v375_v4, 0.0 }
  0xc2   : > { %v510_v7 = vsel %vm446_vm11, %v393_v0, %v478_v2  ;;  %v471_v8 = vmul.f32 0.2, %v375_v4 }
  0xc3   : > { %v542_v9 = vpack.c.bf16 %v510_v7, %v510_v7  ;;  %v518_v10 = vsel %vm454_vm12, %v413_v1, %v486_v5  ;;  %v495_v11 = vsel %vm431_vm13, %v355_v3, %v463_v6 }
  0xc4   : > { %v550_v12 = vpack.c.bf16 %v518_v10, %v518_v10  ;;  %v527_v13 = vpack.c.bf16 %v495_v11, %v495_v11  ;;  %v503_v14 = vsel %vm439_vm14, %v375_v4, %v471_v8 }
  0xc5   : > { %575 = vst.msk [vmem:[%s894_s6 + $0x48] sm:$0xf] %vm556_vm2, %v542_v9  ;;  %v535_v15 = vpack.c.bf16 %v503_v14, %v503_v14 }
  0xc6   : > { %583 = vst.msk [vmem:[%s894_s6 + $0x68] sm:$0xf] %vm556_vm2, %v550_v12 }
  0xc7   : > { %560 = vst.msk [vmem:[%s894_s6 + $0xc] sm:$0xf] %vm556_vm2, %v527_v13  ;;  %v395_v16 = vpop.f32.mrf.mxu2  ;;  %v415_v17 = vpop.f32.mrf.mxu3 }
  0xc8   : > { %568 = vst.msk [vmem:[%s894_s6 + $0x2c] sm:$0xf] %vm556_vm2, %v535_v15  ;;  %vm447_vm15 = vcmp.gt.f32.partialorder %v395_v16, 0.0  ;;  %v479_v18 = vmul.f32 0.2, %v395_v16  ;;  %vm455_vm0 = vcmp.gt.f32.partialorder %v415_v17, 0.0  ;;  %v358_v19 = vpop.f32.mrf.mxu0  ;;  %v378_v20 = vpop.f32.mrf.mxu1 }
  0xc9   : > { %v487_v21 = vmul.f32 0.2, %v415_v17  ;;  %vm432_vm1 = vcmp.gt.f32.partialorder %v358_v19, 0.0  ;;  %v464_v22 = vmul.f32 0.2, %v358_v19  ;;  %vm440_vm3 = vcmp.gt.f32.partialorder %v378_v20, 0.0 }
  0xca   : > { %v511_v23 = vsel %vm447_vm15, %v395_v16, %v479_v18  ;;  %v472_v24 = vmul.f32 0.2, %v378_v20 }
  0xcb   : > { %v543_v25 = vpack.c.bf16 %v511_v23, %v511_v23  ;;  %v519_v26 = vsel %vm455_vm0, %v415_v17, %v487_v21  ;;  %v496_v27 = vsel %vm432_vm1, %v358_v19, %v464_v22 }
  0xcc   : > { %v551_v28 = vpack.c.bf16 %v519_v26, %v519_v26  ;;  %v528_v29 = vpack.c.bf16 %v496_v27, %v496_v27  ;;  %v504_v30 = vsel %vm440_vm3, %v378_v20, %v472_v24 }
  0xcd   : > { %576 = vst.msk [vmem:[%s894_s6 + $0x4c] sm:$0xf] %vm556_vm2, %v543_v25  ;;  %v536_v31 = vpack.c.bf16 %v504_v30, %v504_v30 }
  0xce   : > { %584 = vst.msk [vmem:[%s894_s6 + $0x6c] sm:$0xf] %vm556_vm2, %v551_v28 }
  0xcf   : > { %561 = vst.msk [vmem:[%s894_s6 + $0x10] sm:$0xf] %vm556_vm2, %v528_v29  ;;  %v398_v32 = vpop.f32.mrf.mxu2  ;;  %v418_v33 = vpop.f32.mrf.mxu3 }
  0xd0   : > { %569 = vst.msk [vmem:[%s894_s6 + $0x30] sm:$0xf] %vm556_vm2, %v536_v31  ;;  %vm448_vm4 = vcmp.gt.f32.partialorder %v398_v32, 0.0  ;;  %v480_v34 = vmul.f32 0.2, %v398_v32  ;;  %vm456_vm5 = vcmp.gt.f32.partialorder %v418_v33, 0.0  ;;  %v360_v35 = vpop.f32.mrf.mxu0  ;;  %v380_v36 = vpop.f32.mrf.mxu1 }
  0xd1   : > { %v488_v37 = vmul.f32 0.2, %v418_v33  ;;  %vm433_vm6 = vcmp.gt.f32.partialorder %v360_v35, 0.0  ;;  %v465_v38 = vmul.f32 0.2, %v360_v35  ;;  %vm441_vm7 = vcmp.gt.f32.partialorder %v380_v36, 0.0 }
  0xd2   : > { %v512_v39 = vsel %vm448_vm4, %v398_v32, %v480_v34  ;;  %v473_v40 = vmul.f32 0.2, %v380_v36 }
  0xd3   : > { %v544_v41 = vpack.c.bf16 %v512_v39, %v512_v39  ;;  %v520_v42 = vsel %vm456_vm5, %v418_v33, %v488_v37  ;;  %v497_v43 = vsel %vm433_vm6, %v360_v35, %v465_v38 }
  0xd4   : > { %v552_v44 = vpack.c.bf16 %v520_v42, %v520_v42  ;;  %v529_v45 = vpack.c.bf16 %v497_v43, %v497_v43  ;;  %v505_v46 = vsel %vm441_vm7, %v380_v36, %v473_v40 }
  0xd5   : > { %577 = vst.msk [vmem:[%s894_s6 + $0x50] sm:$0xf] %vm556_vm2, %v544_v41  ;;  %v537_v47 = vpack.c.bf16 %v505_v46, %v505_v46 }
  0xd6   : > { %585 = vst.msk [vmem:[%s894_s6 + $0x70] sm:$0xf] %vm556_vm2, %v552_v44 }
  0xd7   : > { %562 = vst.msk [vmem:[%s894_s6 + $0x14] sm:$0xf] %vm556_vm2, %v529_v45  ;;  %v400_v48 = vpop.f32.mrf.mxu2  ;;  %v420_v49 = vpop.f32.mrf.mxu3 }
  0xd8   : > { %570 = vst.msk [vmem:[%s894_s6 + $0x34] sm:$0xf] %vm556_vm2, %v537_v47  ;;  %vm449_vm8 = vcmp.gt.f32.partialorder %v400_v48, 0.0  ;;  %v481_v50 = vmul.f32 0.2, %v400_v48  ;;  %vm457_vm9 = vcmp.gt.f32.partialorder %v420_v49, 0.0  ;;  %v363_v51 = vpop.f32.mrf.mxu0  ;;  %v383_v52 = vpop.f32.mrf.mxu1 }
  0xd9   : > { %v489_v53 = vmul.f32 0.2, %v420_v49  ;;  %vm434_vm10 = vcmp.gt.f32.partialorder %v363_v51, 0.0  ;;  %v466_v54 = vmul.f32 0.2, %v363_v51  ;;  %vm442_vm11 = vcmp.gt.f32.partialorder %v383_v52, 0.0 }
  0xda   : > { %v513_v55 = vsel %vm449_vm8, %v400_v48, %v481_v50  ;;  %v474_v56 = vmul.f32 0.2, %v383_v52 }
  0xdb   : > { %v545_v57 = vpack.c.bf16 %v513_v55, %v513_v55  ;;  %v521_v58 = vsel %vm457_vm9, %v420_v49, %v489_v53  ;;  %v498_v59 = vsel %vm434_vm10, %v363_v51, %v466_v54 }
  0xdc   : > { %v553_v60 = vpack.c.bf16 %v521_v58, %v521_v58  ;;  %v530_v61 = vpack.c.bf16 %v498_v59, %v498_v59  ;;  %v506_v62 = vsel %vm442_vm11, %v383_v52, %v474_v56 }
  0xdd   : > { %578 = vst.msk [vmem:[%s894_s6 + $0x54] sm:$0xf] %vm556_vm2, %v545_v57  ;;  %v538_v63 = vpack.c.bf16 %v506_v62, %v506_v62 }
  0xde   : > { %586 = vst.msk [vmem:[%s894_s6 + $0x74] sm:$0xf] %vm556_vm2, %v553_v60 }
  0xdf   : > { %563 = vst.msk [vmem:[%s894_s6 + $0x18] sm:$0xf] %vm556_vm2, %v530_v61  ;;  %v403_v0 = vpop.f32.mrf.mxu2  ;;  %v423_v1 = vpop.f32.mrf.mxu3 }
  0xe0   : > { %571 = vst.msk [vmem:[%s894_s6 + $0x38] sm:$0xf] %vm556_vm2, %v538_v63  ;;  %vm450_vm12 = vcmp.gt.f32.partialorder %v403_v0, 0.0  ;;  %v482_v2 = vmul.f32 0.2, %v403_v0  ;;  %vm458_vm13 = vcmp.gt.f32.partialorder %v423_v1, 0.0  ;;  %v365_v3 = vpop.f32.mrf.mxu0  ;;  %v385_v4 = vpop.f32.mrf.mxu1 }
  0xe1   : > { %v490_v5 = vmul.f32 0.2, %v423_v1  ;;  %vm435_vm14 = vcmp.gt.f32.partialorder %v365_v3, 0.0  ;;  %v467_v6 = vmul.f32 0.2, %v365_v3  ;;  %vm443_vm15 = vcmp.gt.f32.partialorder %v385_v4, 0.0 }
  0xe2   : > { %v514_v7 = vsel %vm450_vm12, %v403_v0, %v482_v2  ;;  %v475_v8 = vmul.f32 0.2, %v385_v4 }
  0xe3   : > { %v546_v9 = vpack.c.bf16 %v514_v7, %v514_v7  ;;  %v522_v10 = vsel %vm458_vm13, %v423_v1, %v490_v5  ;;  %v499_v11 = vsel %vm435_vm14, %v365_v3, %v467_v6 }
  0xe4   : > { %v554_v12 = vpack.c.bf16 %v522_v10, %v522_v10  ;;  %v531_v13 = vpack.c.bf16 %v499_v11, %v499_v11  ;;  %v507_v14 = vsel %vm443_vm15, %v385_v4, %v475_v8 }
  0xe5   : > { %579 = vst.msk [vmem:[%s894_s6 + $0x58] sm:$0xf] %vm556_vm2, %v546_v9  ;;  %v539_v15 = vpack.c.bf16 %v507_v14, %v507_v14 }
  0xe6   : > { %587 = vst.msk [vmem:[%s894_s6 + $0x78] sm:$0xf] %vm556_vm2, %v554_v12 }
  0xe7   : > { %564 = vst.msk [vmem:[%s894_s6 + $0x1c] sm:$0xf] %vm556_vm2, %v531_v13  ;;  %v405_v16 = vpop.f32.mrf.mxu2  ;;  %v425_v17 = vpop.f32.mrf.mxu3 }
  0xe8   : > { %572 = vst.msk [vmem:[%s894_s6 + $0x3c] sm:$0xf] %vm556_vm2, %v539_v15  ;;  %vm451_vm0 = vcmp.gt.f32.partialorder %v405_v16, 0.0  ;;  %v483_v18 = vmul.f32 0.2, %v405_v16  ;;  %vm459_vm1 = vcmp.gt.f32.partialorder %v425_v17, 0.0 }
  0xe9   : > { %v491_v19 = vmul.f32 0.2, %v425_v17 }
  0xea   : > { %v515_v20 = vsel %vm451_vm0, %v405_v16, %v483_v18 }
  0xeb   : > { %v547_v21 = vpack.c.bf16 %v515_v20, %v515_v20  ;;  %v523_v22 = vsel %vm459_vm1, %v425_v17, %v491_v19 }
  0xec   : > { %v555_v23 = vpack.c.bf16 %v523_v22, %v523_v22 }
  0xed   : > { %580 = vst.msk [vmem:[%s894_s6 + $0x5c] sm:$0xf] %vm556_vm2, %v547_v21 }
  0xee   : > { %588 = vst.msk [vmem:[%s894_s6 + $0x7c] sm:$0xf] %vm556_vm2, %v555_v23 }
  0xef PF: > { %s12_s9 = sadd.s32 1, %s814_s9  }
  0xf0   : > { %p9_p4 = scmp.ge.s32.totalorder %s12_s9, 4  }
  0xf2   :  { %11 = sbr.rel (!%p9_p4) target bundleno = 1 (0x1), region = 58 }

// kernel: shp_d_net256_forward.8
= control target key start
LH: loop header
LB: loop body
LE: loop exit
PB: predicated region body
PF: predicated region fallthrough
CT: control target
= control target key end

     0   :  { %vm206_vm0 = vcmask 125952   ;;  %vm223_vm1 = vcmask 130048   ;;  %vm319_vm2 = vcmask 253952   ;;  %s638_s1 = inlined_call_operand.vmem [shape: bf16[128,16], index: 1, kind: input, shape index: {}]   ;;  %s639_s0 = inlined_call_operand.vmem [shape: bf16[128,128], index: 0, kind: input, shape index: {}]   ;;  %s640_s2 = inlined_call_operand.vmem [shape: bf16[128,16], index: 2, kind: output, shape index: {0}]   ;;  %s641_s3 = inlined_call_operand.vmem [shape: f32[1,1,32], index: 3, kind: output, shape index: {1}]  }
   0x1   :  { %v408_v0 = vld [vmem:[%s638_s1 + $0x38] sm:$0xff]  ;;  %v407_v1 = vld [vmem:[%s638_s1 + $0x30] sm:$0xff]  ;;  %v406_v2 = vld [vmem:[%s638_s1 + $0x28] sm:$0xff] }
   0x2   :  { %141 = vmatpush.bf16.msra.mxu0 %v408_v0  ;;  %409 = vmatpush.bf16.msra.mxu1 %v408_v0  ;;  %v405_v3 = vld [vmem:[%s638_s1 + $0x20] sm:$0xff]  ;;  %v404_v4 = vld [vmem:[%s638_s1 + $0x18] sm:$0xff]  ;;  %v403_v5 = vld [vmem:[%s638_s1 + $0x10] sm:$0xff] }
   0x3   :  { %410 = vmatpush.bf16.msra.mxu2 %v408_v0  ;;  %411 = vmatpush.bf16.msra.mxu3 %v408_v0  ;;  %v402_v6 = vld [vmem:[%s638_s1 + $0x8] sm:$0xff]  ;;  %v401_v7 = vld [vmem:[%s638_s1] sm:$0xff]  ;;  %v395_v9 = vld [vmem:[%s639_s0 + $0x10] sm:$0xff] }
   0x4   :  { %v393_v8 = vld [vmem:[%s639_s0] sm:$0xff]  ;;  %v399_v11 = vld [vmem:[%s639_s0 + $0x30] sm:$0xff]  ;;  %v394_v12 = vld [vmem:[%s639_s0 + $0x8] sm:$0xff] }
   0x5   :  { %v397_v10 = vld [vmem:[%s639_s0 + $0x20] sm:$0xff]  ;;  %v396_v13 = vld [vmem:[%s639_s0 + $0x18] sm:$0xff]  ;;  %v398_v14 = vld [vmem:[%s639_s0 + $0x28] sm:$0xff] }
   0x6   :  { %142 = vmatpush.bf16.msra.mxu0 %v407_v1  ;;  %412 = vmatpush.bf16.msra.mxu1 %v407_v1  ;;  %v400_v15 = vld [vmem:[%s639_s0 + $0x38] sm:$0xff] }
   0x7   :  { %413 = vmatpush.bf16.msra.mxu2 %v407_v1  ;;  %414 = vmatpush.bf16.msra.mxu3 %v407_v1 }
   0xa   :  { %143 = vmatpush.bf16.msra.mxu0 %v406_v2  ;;  %415 = vmatpush.bf16.msra.mxu1 %v406_v2 }
   0xb   :  { %416 = vmatpush.bf16.msra.mxu2 %v406_v2  ;;  %417 = vmatpush.bf16.msra.mxu3 %v406_v2 }
   0xe   :  { %144 = vmatpush.bf16.msra.mxu0 %v405_v3  ;;  %418 = vmatpush.bf16.msra.mxu1 %v405_v3 }
   0xf   :  { %419 = vmatpush.bf16.msra.mxu2 %v405_v3  ;;  %420 = vmatpush.bf16.msra.mxu3 %v405_v3 }
  0x12   :  { %145 = vmatpush.bf16.msra.mxu0 %v404_v4  ;;  %421 = vmatpush.bf16.msra.mxu1 %v404_v4 }
  0x13   :  { %422 = vmatpush.bf16.msra.mxu2 %v404_v4  ;;  %423 = vmatpush.bf16.msra.mxu3 %v404_v4 }
  0x16   :  { %146 = vmatpush.bf16.msra.mxu0 %v403_v5  ;;  %424 = vmatpush.bf16.msra.mxu1 %v403_v5 }
  0x17   :  { %425 = vmatpush.bf16.msra.mxu2 %v403_v5  ;;  %426 = vmatpush.bf16.msra.mxu3 %v403_v5 }
  0x1a   :  { %147 = vmatpush.bf16.msra.mxu0 %v402_v6  ;;  %427 = vmatpush.bf16.msra.mxu1 %v402_v6 }
  0x1b   :  { %428 = vmatpush.bf16.msra.mxu2 %v402_v6  ;;  %429 = vmatpush.bf16.msra.mxu3 %v402_v6 }
  0x1e   :  { %148 = vmatpush.bf16.msra.mxu0 %v401_v7  ;;  %430 = vmatpush.bf16.msra.mxu1 %v401_v7 }
  0x1f   :  { %431 = vmatpush.bf16.msra.mxu2 %v401_v7  ;;  %432 = vmatpush.bf16.msra.mxu3 %v401_v7 }
  0x21   :  { %149 = vmatmul.bf16.vlgmr.msra.gmra.mxu0 %v393_v8  ;;  %159 = vmatmul.bf16.vlgmr.msra.gmra.mxu1 %v395_v9 }
  0x22   :  { %169 = vmatmul.bf16.vlgmr.msra.gmra.mxu2 %v397_v10  ;;  %179 = vmatmul.bf16.vlgmr.msra.gmra.mxu3 %v399_v11 }
  0x31   :  { %154 = vmatmul.bf16.gmra.mxu0 %v394_v12  ;;  %164 = vmatmul.bf16.gmra.mxu1 %v396_v13 }
  0x32   :  { %174 = vmatmul.bf16.gmra.mxu2 %v398_v14  ;;  %184 = vmatmul.bf16.gmra.mxu3 %v400_v15 }
  0x9e   :  { %v150_v16 = vpop.f32.mrf.mxu0  ;;  %v160_v17 = vpop.f32.mrf.mxu1 }
  0x9f   :  { %v190_v18 = vpack.c.bf16 %v150_v16, %v150_v16  ;;  %v194_v19 = vpack.c.bf16 %v160_v17, %v160_v17  ;;  %v224_v22 = vsel %vm223_vm1, %v150_v16, 0.0  ;;  %v261_v42 = vmul.f32 %v150_v16, %v150_v16 }
  0xa0   :  { %v265_v49 = vmul.f32 %v160_v17, %v160_v17  ;;  %v231_v61 = vsel %vm223_vm1, %v160_v17, 0.0 }
  0xa1   :  { %207 = vst.msk [vmem:[%s640_s2] sm:$0xf] %vm206_vm0, %v190_v18  ;;  %v277_v45 = vsel %vm223_vm1, %v261_v42, 0.0 }
  0xa2   :  { %211 = vst.msk [vmem:[%s640_s2 + $0x10] sm:$0xf] %vm206_vm0, %v194_v19  ;;  %v284_v2 = vsel %vm223_vm1, %v265_v49, 0.0 }
  0xa5   :  { %v511_v20 = vpop.f32.mrf.mxu2  ;;  %v513_v21 = vpop.f32.mrf.mxu3 }
  0xa6   :  { %v152_v23 = vpop.f32.mrf.mxu0  ;;  %v162_v24 = vpop.f32.mrf.mxu1  ;;  %v198_v25 = vpack.c.bf16 %v511_v20, %v511_v20  ;;  %v202_v29 = vpack.c.bf16 %v513_v21, %v513_v21  ;;  %v269_v15 = vmul.f32 %v511_v20, %v511_v20 }
  0xa7   :  { %v191_v26 = vpack.c.bf16 %v152_v23, %v152_v23  ;;  %v225_v27 = vsel %vm223_vm1, %v152_v23, 0.0  ;;  %v195_v28 = vpack.c.bf16 %v162_v24, %v162_v24  ;;  %v262_v33 = vmul.f32 %v152_v23, %v152_v23 }
  0xa8   :  { %v226_v30 = vadd.f32 %v225_v27, %v224_v22  ;;  %215 = vst.msk [vmem:[%s640_s2 + $0x20] sm:$0xf] %vm206_vm0, %v198_v25  ;;  %v266_v62 = vmul.f32 %v162_v24, %v162_v24  ;;  %v233_v3 = vsel %vm223_vm1, %v162_v24, 0.0  ;;  %v239_v23 = vsel %vm223_vm1, %v511_v20, 0.0 }
  0xa9   :  { %208 = vst.msk [vmem:[%s640_s2 + $0x4] sm:$0xf] %vm206_vm0, %v191_v26  ;;  %v278_v44 = vsel %vm223_vm1, %v262_v33, 0.0 }
  0xaa   :  { %212 = vst.msk [vmem:[%s640_s2 + $0x14] sm:$0xf] %vm206_vm0, %v195_v28  ;;  %v279_v50 = vadd.f32 %v278_v44, %v277_v45  ;;  %v286_v7 = vsel %vm223_vm1, %v266_v62, 0.0  ;;  %v292_v28 = vsel %vm223_vm1, %v269_v15, 0.0 }
  0xab   :  { %219 = vst.msk [vmem:[%s640_s2 + $0x30] sm:$0xf] %vm206_vm0, %v202_v29 }
  0xad   :  { %v537_v31 = vpop.f32.mrf.mxu2  ;;  %v539_v32 = vpop.f32.mrf.mxu3 }
  0xae   :  { %v155_v34 = vpop.f32.mrf.mxu0  ;;  %v165_v35 = vpop.f32.mrf.mxu1  ;;  %v199_v36 = vpack.c.bf16 %v537_v31, %v537_v31  ;;  %v203_v40 = vpack.c.bf16 %v539_v32, %v539_v32  ;;  %v270_v24 = vmul.f32 %v537_v31, %v537_v31  ;;  %v241_v29 = vsel %vm223_vm1, %v537_v31, 0.0 }
  0xaf   :  { %v192_v37 = vpack.c.bf16 %v155_v34, %v155_v34  ;;  %v227_v38 = vsel %vm223_vm1, %v155_v34, 0.0  ;;  %v196_v39 = vpack.c.bf16 %v165_v35, %v165_v35  ;;  %v263_v43 = vmul.f32 %v155_v34, %v155_v34 }
  0xb0   :  { %v228_v41 = vadd.f32 %v227_v38, %v226_v30  ;;  %216 = vst.msk [vmem:[%s640_s2 + $0x24] sm:$0xf] %vm206_vm0, %v199_v36  ;;  %v267_v4 = vmul.f32 %v165_v35, %v165_v35  ;;  %v235_v8 = vsel %vm223_vm1, %v165_v35, 0.0  ;;  %v294_v34 = vsel %vm223_vm1, %v270_v24, 0.0 }
  0xb1   :  { %209 = vst.msk [vmem:[%s640_s2 + $0x8] sm:$0xf] %vm206_vm0, %v192_v37  ;;  %v280_v46 = vsel %vm223_vm1, %v263_v43, 0.0  ;;  %v247_v31 = vsel %vm223_vm1, %v513_v21, 0.0  ;;  %v274_v44 = vmul.f32 %v539_v32, %v539_v32 }
  0xb2   :  { %213 = vst.msk [vmem:[%s640_s2 + $0x18] sm:$0xf] %vm206_vm0, %v196_v39  ;;  %v281_v59 = vadd.f32 %v280_v46, %v279_v50  ;;  %v288_v16 = vsel %vm223_vm1, %v267_v4, 0.0  ;;  %v273_v39 = vmul.f32 %v513_v21, %v513_v21  ;;  %v249_v50 = vsel %vm223_vm1, %v539_v32, 0.0 }
  0xb3   :  { %220 = vst.msk [vmem:[%s640_s2 + $0x34] sm:$0xf] %vm206_vm0, %v203_v40 }
  0xb4   :  { %v300_v49 = vsel %vm223_vm1, %v273_v39, 0.0 }
  0xb5   :  { %v175_v47 = vpop.f32.mrf.mxu2  ;;  %v565_v48 = vpop.f32.mrf.mxu3 }
  0xb6   :  { %v157_v51 = vpop.f32.mrf.mxu0  ;;  %v167_v52 = vpop.f32.mrf.mxu1  ;;  %v200_v53 = vpack.c.bf16 %v175_v47, %v175_v47  ;;  %v204_v54 = vpack.c.bf16 %v565_v48, %v565_v48  ;;  %v271_v30 = vmul.f32 %v175_v47, %v175_v47  ;;  %v243_v35 = vsel %vm223_vm1, %v175_v47, 0.0 }
  0xb7   :  { %v193_v55 = vpack.c.bf16 %v157_v51, %v157_v51  ;;  %v229_v56 = vsel %vm223_vm1, %v157_v51, 0.0  ;;  %v264_v57 = vmul.f32 %v157_v51, %v157_v51  ;;  %v197_v58 = vpack.c.bf16 %v167_v52, %v167_v52 }
  0xb8   :  { %v230_v60 = vadd.f32 %v229_v56, %v228_v41  ;;  %217 = vst.msk [vmem:[%s640_s2 + $0x28] sm:$0xf] %vm206_vm0, %v200_v53  ;;  %v268_v9 = vmul.f32 %v167_v52, %v167_v52  ;;  %v237_v17 = vsel %vm223_vm1, %v167_v52, 0.0  ;;  %v296_v40 = vsel %vm223_vm1, %v271_v30, 0.0 }
  0xb9   :  { %210 = vst.msk [vmem:[%s640_s2 + $0xc] sm:$0xf] %vm206_vm0, %v193_v55  ;;  %v282_v63 = vsel %vm223_vm1, %v264_v57, 0.0  ;;  %v275_v51 = vmul.f32 %v565_v48, %v565_v48  ;;  %v251_v21 = vsel %vm223_vm1, %v565_v48, 0.0 }
  0xba   :  { %v232_v0 = vadd.f32 %v231_v61, %v230_v60  ;;  %v283_v1 = vadd.f32 %v282_v63, %v281_v59  ;;  %214 = vst.msk [vmem:[%s640_s2 + $0x1c] sm:$0xf] %vm206_vm0, %v197_v58  ;;  %v290_v25 = vsel %vm223_vm1, %v268_v9, 0.0 }
  0xbb   :  { %221 = vst.msk [vmem:[%s640_s2 + $0x38] sm:$0xf] %vm206_vm0, %v204_v54  ;;  %v302_v54 = vsel %vm223_vm1, %v274_v44, 0.0  ;;  %v304_v58 = vsel %vm223_vm1, %v275_v51, 0.0 }
  0xbc   :  { %v285_v5 = vadd.f32 %v284_v2, %v283_v1  ;;  %v234_v6 = vadd.f32 %v233_v3, %v232_v0 }
  0xbd   :  { %v177_v10 = vpop.f32.mrf.mxu2  ;;  %v187_v11 = vpop.f32.mrf.mxu3 }
  0xbe   :  { %v236_v12 = vadd.f32 %v235_v8, %v234_v6  ;;  %v287_v13 = vadd.f32 %v286_v7, %v285_v5  ;;  %v201_v14 = vpack.c.bf16 %v177_v10, %v177_v10  ;;  %v205_v18 = vpack.c.bf16 %v187_v11, %v187_v11 }
  0xbf   :  { %v272_v36 = vmul.f32 %v177_v10, %v177_v10  ;;  %v245_v41 = vsel %vm223_vm1, %v177_v10, 0.0  ;;  %v276_v55 = vmul.f32 %v187_v11, %v187_v11  ;;  %v253_v59 = vsel %vm223_vm1, %v187_v11, 0.0 }
  0xc0   :  { %v238_v19 = vadd.f32 %v237_v17, %v236_v12  ;;  %v289_v22 = vadd.f32 %v288_v16, %v287_v13  ;;  %218 = vst.msk [vmem:[%s640_s2 + $0x2c] sm:$0xf] %vm206_vm0, %v201_v14 }
  0xc1   :  { %222 = vst.msk [vmem:[%s640_s2 + $0x3c] sm:$0xf] %vm206_vm0, %v205_v18  ;;  %v298_v45 = vsel %vm223_vm1, %v272_v36, 0.0  ;;  %v306_v32 = vsel %vm223_vm1, %v276_v55, 0.0  ;;  %s434_s2 = smov 16  }
  0xc2   :  { %v240_v26 = vadd.f32 %v239_v23, %v238_v19  ;;  %v291_v27 = vadd.f32 %v290_v25, %v289_v22 }
  0xc4   :  { %v293_v33 = vadd.f32 %v292_v28, %v291_v27  ;;  %v242_v20 = vadd.f32 %v241_v29, %v240_v26 }
  0xc6   :  { %v244_v37 = vadd.f32 %v243_v35, %v242_v20  ;;  %v295_v38 = vadd.f32 %v294_v34, %v293_v33 }
  0xc8   :  { %v297_v42 = vadd.f32 %v296_v40, %v295_v38  ;;  %v246_v43 = vadd.f32 %v245_v41, %v244_v37 }
  0xca   :  { %v248_v46 = vadd.f32 %v247_v31, %v246_v43  ;;  %v299_v47 = vadd.f32 %v298_v45, %v297_v42 }
  0xcc   :  { %v301_v52 = vadd.f32 %v300_v49, %v299_v47  ;;  %v250_v53 = vadd.f32 %v249_v50, %v248_v46 }
  0xce   :  { %v252_v56 = vadd.f32 %v251_v21, %v250_v53  ;;  %v303_v57 = vadd.f32 %v302_v54, %v301_v52 }
  0xd0   :  { %v305_v60 = vadd.f32 %v304_v58, %v303_v57  ;;  %v254_v61 = vadd.f32 %v253_v59, %v252_v56 }
  0xd2   :  { %v307_v62 = vadd.f32 %v306_v32, %v305_v60  ;;  %v255_v48 = vrot.slane %v254_v61, 4 }
  0xd4   :  { %v308_v63 = vrot.slane %v307_v62, 4  ;;  %v256_v5 = vadd.f32 %v255_v48, %v254_v61 }
  0xd6   :  { %v309_v0 = vadd.f32 %v308_v63, %v307_v62  ;;  %v257_v6 = vrot.slane %v256_v5, 2 }
  0xd8   :  { %v310_v1 = vrot.slane %v309_v0, 2  ;;  %v258_v7 = vadd.f32 %v257_v6, %v256_v5 }
  0xda   :  { %v311_v2 = vadd.f32 %v310_v1, %v309_v0  ;;  %v259_v8 = vrot.slane %v258_v7, 1 }
  0xdc   :  { %v312_v3 = vrot.slane %v311_v2, 1  ;;  %v260_v9 = vadd.f32 %v259_v8, %v258_v7 }
  0xde   :  { %v313_v4 = vadd.f32 %v312_v3, %v311_v2 }
  0xe0   :  { %315 = vrot.lane.b32.xlu0 %v313_v4, %s434_s2 }
 0x152   :  { %v316_v10 = vpop.permute.xlu0 %315 }
 0x153   :  { %v318_v11 = vsel %vm223_vm1, %v260_v9, %v316_v10 }
 0x154   :  { %320 = vst.msk [vmem:[%s641_s3] sm:$0x1] %vm319_vm2, %v318_v11 }

// kernel: shp_d_net256_forward.9
= control target key start
LH: loop header
LB: loop body
LE: loop exit
PB: predicated region body
PF: predicated region fallthrough
CT: control target
= control target key end

     0   :  { %vm207_vm0 = vcmask 257024   ;;  %vm212_vm1 = vcmask 261120   ;;  %s375_s12 = smov 32   ;;  %vm248_vm2 = vcmask 516096   ;;  %s496_s1 = inlined_call_operand.vmem [shape: bf16[256,32], index: 1, kind: input, shape index: {}]   ;;  %s497_s0 = inlined_call_operand.vmem [shape: bf16[32,256], index: 0, kind: input, shape index: {}]   ;;  %s498_s2 = inlined_call_operand.vmem [shape: bf16[32,32], index: 2, kind: output, shape index: {0}]   ;;  %s499_s3 = inlined_call_operand.vmem [shape: f32[1,1,64], index: 3, kind: output, shape index: {1}]  }
   0x1   :  { %v349_v0 = vld [vmem:[%s496_s1 + $0x38] sm:$0xff]  ;;  %v348_v2 = vld [vmem:[%s496_s1 + $0x30] sm:$0xff]  ;;  %v347_v4 = vld [vmem:[%s496_s1 + $0x28] sm:$0xff] }
   0x2   :  { %v357_v1 = vld [vmem:[%s496_s1 + $0x78] sm:$0xff]  ;;  %165 = vmatpush.bf16.msra.mxu0 %v349_v0  ;;  %358 = vmatpush.bf16.msra.mxu2 %v349_v0  ;;  %v356_v3 = vld [vmem:[%s496_s1 + $0x70] sm:$0xff]  ;;  %v355_v5 = vld [vmem:[%s496_s1 + $0x68] sm:$0xff] }
   0x3   :  { %184 = vmatpush.bf16.msra.mxu1 %v357_v1  ;;  %366 = vmatpush.bf16.msra.mxu3 %v357_v1  ;;  %v346_v6 = vld [vmem:[%s496_s1 + $0x20] sm:$0xff]  ;;  %v345_v8 = vld [vmem:[%s496_s1 + $0x18] sm:$0xff]  ;;  %v344_v10 = vld [vmem:[%s496_s1 + $0x10] sm:$0xff] }
   0x4   :  { %v354_v7 = vld [vmem:[%s496_s1 + $0x60] sm:$0xff]  ;;  %v353_v9 = vld [vmem:[%s496_s1 + $0x58] sm:$0xff]  ;;  %v352_v11 = vld [vmem:[%s496_s1 + $0x50] sm:$0xff] }
   0x5   :  { %v343_v12 = vld [vmem:[%s496_s1 + $0x8] sm:$0xff]  ;;  %v342_v14 = vld [vmem:[%s496_s1] sm:$0xff]  ;;  %v268_v18 = vld [vmem:[%s497_s0 + $0x10] sm:$0xf] }
   0x6   :  { %166 = vmatpush.bf16.msra.mxu0 %v348_v2  ;;  %359 = vmatpush.bf16.msra.mxu2 %v348_v2  ;;  %v351_v13 = vld [vmem:[%s496_s1 + $0x48] sm:$0xff]  ;;  %v350_v15 = vld [vmem:[%s496_s1 + $0x40] sm:$0xff]  ;;  %v341_v19 = vld [vmem:[%s497_s0 + $0x14] sm:$0xf0] }
   0x7   :  { %185 = vmatpush.bf16.msra.mxu1 %v356_v3  ;;  %367 = vmatpush.bf16.msra.mxu3 %v356_v3  ;;  %v260_v16 = vld [vmem:[%s497_s0] sm:$0xf]  ;;  %v339_v17 = vld [vmem:[%s497_s0 + $0x4] sm:$0xf0]  ;;  %v338_v20 = vld [vmem:[%s497_s0 + $0x4] sm:$0xf]  ;;  %v269_v25 = vor.u32 %v341_v19, %v268_v18 }
   0x8   :  { %v262_v21 = vld [vmem:[%s497_s0 + $0x8] sm:$0xf0]  ;;  %v340_v22 = vld [vmem:[%s497_s0 + $0x14] sm:$0xf]  ;;  %v270_v23 = vld [vmem:[%s497_s0 + $0x18] sm:$0xf0]  ;;  %v261_v24 = vor.u32 %v339_v17, %v260_v16 }
   0x9   :  { %v265_v26 = vor.u32 %v338_v20, %v262_v21  ;;  %v273_v27 = vor.u32 %v340_v22, %v270_v23 }
   0xa   :  { %167 = vmatpush.bf16.msra.mxu0 %v347_v4  ;;  %360 = vmatpush.bf16.msra.mxu2 %v347_v4 }
   0xb   :  { %186 = vmatpush.bf16.msra.mxu1 %v355_v5  ;;  %368 = vmatpush.bf16.msra.mxu3 %v355_v5 }
   0xe   :  { %168 = vmatpush.bf16.msra.mxu0 %v346_v6  ;;  %361 = vmatpush.bf16.msra.mxu2 %v346_v6 }
   0xf   :  { %187 = vmatpush.bf16.msra.mxu1 %v354_v7  ;;  %369 = vmatpush.bf16.msra.mxu3 %v354_v7 }
  0x12   :  { %169 = vmatpush.bf16.msra.mxu0 %v345_v8  ;;  %362 = vmatpush.bf16.msra.mxu2 %v345_v8 }
  0x13   :  { %188 = vmatpush.bf16.msra.mxu1 %v353_v9  ;;  %370 = vmatpush.bf16.msra.mxu3 %v353_v9 }
  0x16   :  { %170 = vmatpush.bf16.msra.mxu0 %v344_v10  ;;  %363 = vmatpush.bf16.msra.mxu2 %v344_v10 }
  0x17   :  { %189 = vmatpush.bf16.msra.mxu1 %v352_v11  ;;  %371 = vmatpush.bf16.msra.mxu3 %v352_v11 }
  0x1a   :  { %171 = vmatpush.bf16.msra.mxu0 %v343_v12  ;;  %364 = vmatpush.bf16.msra.mxu2 %v343_v12 }
  0x1b   :  { %190 = vmatpush.bf16.msra.mxu1 %v351_v13  ;;  %372 = vmatpush.bf16.msra.mxu3 %v351_v13 }
  0x1e   :  { %172 = vmatpush.bf16.msra.mxu0 %v342_v14  ;;  %365 = vmatpush.bf16.msra.mxu2 %v342_v14 }
  0x1f   :  { %191 = vmatpush.bf16.msra.mxu1 %v350_v15  ;;  %373 = vmatpush.bf16.msra.mxu3 %v350_v15 }
  0x21   :  { %173 = vmatmul.bf16.vlgmr.msra.gmra.mxu0 %v261_v24  ;;  %178 = vmatmul.bf16.vlgmr.msra.gmra.mxu2 %v269_v25 }
  0x22   :  { %192 = vmatmul.bf16.vlgmr.msra.gmra.mxu1 %v265_v26  ;;  %197 = vmatmul.bf16.vlgmr.msra.gmra.mxu3 %v273_v27 }
  0x9e   :  { %v174_v28 = vpop.f32.mrf.mxu0 }
  0x9f   :  { %v193_v29 = vpop.f32.mrf.mxu1 }
  0xa0   :  { %v194_v30 = vadd.f32 %v193_v29, %v174_v28 }
  0xa2   :  { %v203_v31 = vpack.c.bf16 %v194_v30, %v194_v30  ;;  %v226_v37 = vmul.f32 %v194_v30, %v194_v30  ;;  %v213_v40 = vsel %vm212_vm1, %v194_v30, 0.0 }
  0xa4   :  { %208 = vst.msk [vmem:[%s498_s2] sm:$0xf] %vm207_vm0, %v203_v31  ;;  %v179_v32 = vpop.f32.mrf.mxu2  ;;  %v230_v45 = vsel %vm212_vm1, %v226_v37, 0.0 }
  0xa5   :  { %v198_v33 = vpop.f32.mrf.mxu3 }
  0xa6   :  { %v199_v34 = vadd.f32 %v198_v33, %v179_v32  ;;  %v176_v35 = vpop.f32.mrf.mxu0 }
  0xa7   :  { %v195_v36 = vpop.f32.mrf.mxu1 }
  0xa8   :  { %v205_v38 = vpack.c.bf16 %v199_v34, %v199_v34  ;;  %v196_v39 = vadd.f32 %v195_v36, %v176_v35  ;;  %v216_v46 = vsel %vm212_vm1, %v199_v34, 0.0  ;;  %v228_v47 = vmul.f32 %v199_v34, %v199_v34 }
  0xaa   :  { %210 = vst.msk [vmem:[%s498_s2 + $0x8] sm:$0xf] %vm207_vm0, %v205_v38  ;;  %v204_v41 = vpack.c.bf16 %v196_v39, %v196_v39  ;;  %v214_v42 = vsel %vm212_vm1, %v196_v39, 0.0  ;;  %v227_v43 = vmul.f32 %v196_v39, %v196_v39  ;;  %v233_v54 = vsel %vm212_vm1, %v228_v47, 0.0 }
  0xab   :  { %v215_v44 = vadd.f32 %v214_v42, %v213_v40 }
  0xac   :  { %209 = vst.msk [vmem:[%s498_s2 + $0x4] sm:$0xf] %vm207_vm0, %v204_v41  ;;  %v231_v48 = vsel %vm212_vm1, %v227_v43, 0.0  ;;  %v181_v49 = vpop.f32.mrf.mxu2 }
  0xad   :  { %v232_v50 = vadd.f32 %v231_v48, %v230_v45  ;;  %v200_v51 = vpop.f32.mrf.mxu3  ;;  %v217_v52 = vadd.f32 %v216_v46, %v215_v44 }
  0xae   :  { %v201_v53 = vadd.f32 %v200_v51, %v181_v49 }
  0xaf   :  { %v234_v59 = vadd.f32 %v233_v54, %v232_v50 }
  0xb0   :  { %v206_v55 = vpack.c.bf16 %v201_v53, %v201_v53  ;;  %v218_v56 = vsel %vm212_vm1, %v201_v53, 0.0  ;;  %v229_v57 = vmul.f32 %v201_v53, %v201_v53 }
  0xb1   :  { %v219_v58 = vadd.f32 %v218_v56, %v217_v52 }
  0xb2   :  { %211 = vst.msk [vmem:[%s498_s2 + $0xc] sm:$0xf] %vm207_vm0, %v206_v55  ;;  %v235_v60 = vsel %vm212_vm1, %v229_v57, 0.0 }
  0xb3   :  { %v236_v61 = vadd.f32 %v235_v60, %v234_v59  ;;  %v220_v4 = vrot.slane %v219_v58, 4 }
  0xb5   :  { %v237_v62 = vrot.slane %v236_v61, 4  ;;  %v221_v5 = vadd.f32 %v220_v4, %v219_v58 }
  0xb7   :  { %v238_v63 = vadd.f32 %v237_v62, %v236_v61  ;;  %v222_v6 = vrot.slane %v221_v5, 2 }
  0xb9   :  { %v239_v0 = vrot.slane %v238_v63, 2  ;;  %v223_v7 = vadd.f32 %v222_v6, %v221_v5 }
  0xbb   :  { %v240_v1 = vadd.f32 %v239_v0, %v238_v63  ;;  %v224_v8 = vrot.slane %v223_v7, 1 }
  0xbd   :  { %v241_v2 = vrot.slane %v240_v1, 1  ;;  %v225_v9 = vadd.f32 %v224_v8, %v223_v7 }
  0xbf   :  { %v242_v3 = vadd.f32 %v241_v2, %v240_v1 }
  0xc1   :  { %244 = vrot.lane.b32.xlu0 %v242_v3, %s375_s12 }
 0x133   :  { %v245_v10 = vpop.permute.xlu0 %244 }
 0x134   :  { %v247_v11 = vsel %vm212_vm1, %v225_v9, %v245_v10 }
 0x135   :  { %249 = vst.msk [vmem:[%s499_s3] sm:$0x1] %vm248_vm2, %v247_v11 }

// kernel: shp_d_net256_forward.11
= control target key start
LH: loop header
LB: loop body
LE: loop exit
PB: predicated region body
PF: predicated region fallthrough
CT: control target
= control target key end

     0   :  { %vm30_vm1 = vcmask 519168   ;;  %s70_s0 = inlined_call_operand.vmem [shape: bf16[8,64], index: 0, kind: input, shape index: {}]   ;;  %s71_s1 = inlined_call_operand.vmem [shape: f32[1,64], index: 1, kind: input, shape index: {}]   ;;  %s72_s2 = inlined_call_operand.vmem [shape: f32[1,64], index: 2, kind: input, shape index: {}]   ;;  %s73_s3 = inlined_call_operand.vmem [shape: bf16[8,64], index: 3, kind: output, shape index: {}]  }
   0x1   :  { %v14_v0 = vld [vmem:[%s70_s0] sm:$0xf] }
   0x2   :  { %v36_v1 = vld [vmem:[%s71_s1] ss:$0 sm:$0xff]  ;;  %v15_v2 = vunpack.c.l.bf16 %v14_v0 }
   0x3   :  { %v37_v3 = vld [vmem:[%s72_s2] ss:$0 sm:$0xff] }
   0x4   :  { %v20_v4 = vmul.f32 %v36_v1, %v15_v2 }
   0x6   :  { %v25_v5 = vadd.f32 %v37_v3, %v20_v4 }
   0x8   :  { %vm26_vm0 = vcmp.gt.f32.partialorder %v25_v5, 0.0  ;;  %v27_v6 = vmul.f32 0.2, %v25_v5 }
   0xa   :  { %v28_v7 = vsel %vm26_vm0, %v25_v5, %v27_v6 }
   0xb   :  { %v29_v8 = vpack.c.bf16 %v28_v7, %v28_v7 }
   0xd   :  { %31 = vst.msk [vmem:[%s73_s3] sm:$0xf] %vm30_vm1, %v29_v8 }

// kernel: shp_d_net256_forward.10
= control target key start
LH: loop header
LB: loop body
LE: loop exit
PB: predicated region body
PF: predicated region fallthrough
CT: control target
= control target key end

     0   :  { %vm338_vm0 = vcmask 519168   ;;  %vm340_vm1 = vcmask 523264   ;;  %s531_s26 = smov 64   ;;  %s663_s1 = inlined_call_operand.vmem [shape: bf16[512,64], index: 1, kind: input, shape index: {}]   ;;  %s664_s0 = inlined_call_operand.vmem [shape: bf16[8,512], index: 0, kind: input, shape index: {}]   ;;  %s665_s2 = inlined_call_operand.vmem [shape: bf16[8,64], index: 2, kind: output, shape index: {0}]   ;;  %s666_s3 = inlined_call_operand.vmem [shape: f32[1,1,128], index: 3, kind: output, shape index: {1}]  }
   0x1   :  { %v505_v0 = vld [vmem:[%s663_s1 + $0x38] sm:$0xff]  ;;  %v504_v4 = vld [vmem:[%s663_s1 + $0x30] sm:$0xff]  ;;  %v503_v8 = vld [vmem:[%s663_s1 + $0x28] sm:$0xff] }
   0x2   :  { %v513_v1 = vld [vmem:[%s663_s1 + $0x78] sm:$0xff]  ;;  %285 = vmatpush.bf16.msra.mxu0 %v505_v0  ;;  %v512_v5 = vld [vmem:[%s663_s1 + $0x70] sm:$0xff]  ;;  %v511_v9 = vld [vmem:[%s663_s1 + $0x68] sm:$0xff] }
   0x3   :  { %v521_v2 = vld [vmem:[%s663_s1 + $0xb8] sm:$0xff]  ;;  %298 = vmatpush.bf16.msra.mxu1 %v513_v1  ;;  %v520_v6 = vld [vmem:[%s663_s1 + $0xb0] sm:$0xff]  ;;  %v519_v10 = vld [vmem:[%s663_s1 + $0xa8] sm:$0xff] }
   0x4   :  { %v529_v3 = vld [vmem:[%s663_s1 + $0xf8] sm:$0xff]  ;;  %311 = vmatpush.bf16.msra.mxu2 %v521_v2  ;;  %v528_v7 = vld [vmem:[%s663_s1 + $0xf0] sm:$0xff]  ;;  %v527_v11 = vld [vmem:[%s663_s1 + $0xe8] sm:$0xff] }
   0x5   :  { %324 = vmatpush.bf16.msra.mxu3 %v529_v3  ;;  %v502_v12 = vld [vmem:[%s663_s1 + $0x20] sm:$0xff]  ;;  %v501_v16 = vld [vmem:[%s663_s1 + $0x18] sm:$0xff]  ;;  %v500_v20 = vld [vmem:[%s663_s1 + $0x10] sm:$0xff] }
   0x6   :  { %286 = vmatpush.bf16.msra.mxu0 %v504_v4  ;;  %v510_v13 = vld [vmem:[%s663_s1 + $0x60] sm:$0xff]  ;;  %v509_v17 = vld [vmem:[%s663_s1 + $0x58] sm:$0xff]  ;;  %v508_v21 = vld [vmem:[%s663_s1 + $0x50] sm:$0xff] }
   0x7   :  { %299 = vmatpush.bf16.msra.mxu1 %v512_v5  ;;  %v518_v14 = vld [vmem:[%s663_s1 + $0xa0] sm:$0xff]  ;;  %v517_v18 = vld [vmem:[%s663_s1 + $0x98] sm:$0xff]  ;;  %v516_v22 = vld [vmem:[%s663_s1 + $0x90] sm:$0xff] }
   0x8   :  { %312 = vmatpush.bf16.msra.mxu2 %v520_v6  ;;  %v526_v15 = vld [vmem:[%s663_s1 + $0xe0] sm:$0xff]  ;;  %v525_v19 = vld [vmem:[%s663_s1 + $0xd8] sm:$0xff]  ;;  %v524_v23 = vld [vmem:[%s663_s1 + $0xd0] sm:$0xff] }
   0x9   :  { %325 = vmatpush.bf16.msra.mxu3 %v528_v7  ;;  %v499_v24 = vld [vmem:[%s663_s1 + $0x8] sm:$0xff]  ;;  %v13_v26 = vld [vmem:[%s664_s0] sm:$0xff] }
   0xa   :  { %287 = vmatpush.bf16.msra.mxu0 %v503_v8  ;;  %v507_v25 = vld [vmem:[%s663_s1 + $0x48] sm:$0xff]  ;;  %v81_v30 = vunpack.c.l.b16 %v13_v26  ;;  %v82_v31 = vunpack.c.h.b16 %v13_v26  ;;  %v498_v32 = vld [vmem:[%s663_s1] sm:$0xff] }
   0xb   :  { %300 = vmatpush.bf16.msra.mxu1 %v511_v9  ;;  %v515_v27 = vld [vmem:[%s663_s1 + $0x88] sm:$0xff]  ;;  %v506_v33 = vld [vmem:[%s663_s1 + $0x40] sm:$0xff] }
   0xc   :  { %313 = vmatpush.bf16.msra.mxu2 %v519_v10  ;;  %v523_v28 = vld [vmem:[%s663_s1 + $0xc8] sm:$0xff]  ;;  %v514_v36 = vld [vmem:[%s663_s1 + $0x80] sm:$0xff]  ;;  %v85_v38 = vpack.c.b16 %v81_v30, %v81_v30  ;;  %v86_v39 = vpack.c.b16 %v82_v31, %v82_v31 }
   0xd   :  { %326 = vmatpush.bf16.msra.mxu3 %v527_v11  ;;  %v14_v29 = vld [vmem:[%s664_s0 + $0x8] sm:$0xff]  ;;  %v522_v37 = vld [vmem:[%s663_s1 + $0xc0] sm:$0xff] }
   0xe   :  { %288 = vmatpush.bf16.msra.mxu0 %v502_v12  ;;  %v83_v34 = vunpack.c.l.b16 %v14_v29  ;;  %v84_v35 = vunpack.c.h.b16 %v14_v29 }
   0xf   :  { %301 = vmatpush.bf16.msra.mxu1 %v510_v13 }
  0x10   :  { %314 = vmatpush.bf16.msra.mxu2 %v518_v14  ;;  %v87_v40 = vpack.c.b16 %v83_v34, %v83_v34  ;;  %v88_v41 = vpack.c.b16 %v84_v35, %v84_v35 }
  0x11   :  { %327 = vmatpush.bf16.msra.mxu3 %v526_v15 }
  0x12   :  { %289 = vmatpush.bf16.msra.mxu0 %v501_v16 }
  0x13   :  { %302 = vmatpush.bf16.msra.mxu1 %v509_v17 }
  0x14   :  { %315 = vmatpush.bf16.msra.mxu2 %v517_v18 }
  0x15   :  { %328 = vmatpush.bf16.msra.mxu3 %v525_v19 }
  0x16   :  { %290 = vmatpush.bf16.msra.mxu0 %v500_v20 }
  0x17   :  { %303 = vmatpush.bf16.msra.mxu1 %v508_v21 }
  0x18   :  { %316 = vmatpush.bf16.msra.mxu2 %v516_v22 }
  0x19   :  { %329 = vmatpush.bf16.msra.mxu3 %v524_v23 }
  0x1a   :  { %291 = vmatpush.bf16.msra.mxu0 %v499_v24 }
  0x1b   :  { %304 = vmatpush.bf16.msra.mxu1 %v507_v25 }
  0x1c   :  { %317 = vmatpush.bf16.msra.mxu2 %v515_v27 }
  0x1d   :  { %330 = vmatpush.bf16.msra.mxu3 %v523_v28 }
  0x1e   :  { %292 = vmatpush.bf16.msra.mxu0 %v498_v32 }
  0x1f   :  { %305 = vmatpush.bf16.msra.mxu1 %v506_v33 }
  0x20   :  { %318 = vmatpush.bf16.msra.mxu2 %v514_v36 }
  0x21   :  { %331 = vmatpush.bf16.msra.mxu3 %v522_v37  ;;  %293 = vmatmul.bf16.vlgmr.msra.gmra.mxu0 %v85_v38 }
  0x22   :  { %306 = vmatmul.bf16.vlgmr.msra.gmra.mxu1 %v86_v39 }
  0x23   :  { %319 = vmatmul.bf16.vlgmr.msra.gmra.mxu2 %v87_v40 }
  0x24   :  { %332 = vmatmul.bf16.vlgmr.msra.gmra.mxu3 %v88_v41 }
  0x9e   :  { %v294_v42 = vpop.f32.mrf.mxu0 }
  0x9f   :  { %v307_v43 = vpop.f32.mrf.mxu1 }
  0xa0   :  { %v308_v44 = vadd.f32 %v307_v43, %v294_v42 }
  0xa6   :  { %v320_v45 = vpop.f32.mrf.mxu2  ;;  %v296_v48 = vpop.f32.mrf.mxu0 }
  0xa7   :  { %v333_v46 = vpop.f32.mrf.mxu3  ;;  %v321_v47 = vadd.f32 %v320_v45, %v308_v44  ;;  %v309_v49 = vpop.f32.mrf.mxu1 }
  0xa9   :  { %v334_v50 = vadd.f32 %v333_v46, %v321_v47 }
  0xab   :  { %v337_v51 = vpack.c.bf16 %v334_v50, %v334_v50  ;;  %v348_v52 = vmul.f32 %v334_v50, %v334_v50  ;;  %v341_v62 = vsel %vm340_vm1, %v334_v50, 0.0 }
  0xac   :  { %v342_v63 = vrot.slane %v341_v62, 4 }
  0xad   :  { %339 = vst.msk [vmem:[%s665_s2] sm:$0xf] %vm338_vm0, %v337_v51  ;;  %v349_v53 = vsel %vm340_vm1, %v348_v52, 0.0 }
  0xae   :  { %v322_v54 = vpop.f32.mrf.mxu2  ;;  %v350_v56 = vrot.slane %v349_v53, 4  ;;  %v343_v0 = vadd.f32 %v342_v63, %v341_v62 }
  0xaf   :  { %v335_v55 = vpop.f32.mrf.mxu3 }
  0xb0   :  { %v351_v57 = vadd.f32 %v350_v56, %v349_v53  ;;  %v344_v1 = vrot.slane %v343_v0, 2 }
  0xb2   :  { %v352_v58 = vrot.slane %v351_v57, 2  ;;  %v345_v2 = vadd.f32 %v344_v1, %v343_v0 }
  0xb4   :  { %v353_v59 = vadd.f32 %v352_v58, %v351_v57  ;;  %v346_v3 = vrot.slane %v345_v2, 1 }
  0xb6   :  { %v354_v60 = vrot.slane %v353_v59, 1  ;;  %v347_v4 = vadd.f32 %v346_v3, %v345_v2 }
  0xb8   :  { %v355_v61 = vadd.f32 %v354_v60, %v353_v59 }
  0xba   :  { %357 = vrot.lane.b32.xlu0 %v355_v61, %s531_s26 }
 0x12c   :  { %v358_v5 = vpop.permute.xlu0 %357 }
 0x12d   :  { %v360_v6 = vsel %vm340_vm1, %v347_v4, %v358_v5 }
 0x12e   :  { %361 = vst [vmem:[%s666_s3] sm:$0x1] %v360_v6 }

</bundles_post_ra>
